<compile_context>
chip_gen: v7x
topology: tpu7x:2x2x1
jax: 0.10.0
libtpu: 0.0.40
codegen_flags: <defaults>
</compile_context>

<pallas_src>
import functools

import jax
import jax.numpy as jnp
from jax import lax
from jax.experimental import pallas as pl
from jax.experimental.pallas import tpu as pltpu


# ----------------------------------------------------------------------------
# Fused kernel: LSTM layer 1 (bi) -> LSTM layer 2 (bi) -> ReLU/Linear/ReLU/Linear
# -> Sigmoid.  Gate order follows PyTorch (i, f, g, o); combined gate layout is
# interleaved per direction: [i_f, i_b, f_f, f_b, g_f, g_b, o_f, o_b], each H wide,
# so gate slices of width 2H line up exactly with the [fwd | bwd] state layout.
# ----------------------------------------------------------------------------
def _fused_kernel(x_ref, wih1_ref, b1_ref, whh1_ref,
                  wih2_ref, b2_ref, whh2_ref,
                  wh1_ref, bh1_ref, wh2_ref, bh2_ref,
                  out_ref, xw_sc, seq_sc, *, T, Bp, H):
    H2 = 2 * H
    # Lane mask selecting forward-direction gate columns (built once, hoisted).
    lane = lax.broadcasted_iota(jnp.int32, (Bp, 8 * H), 1)
    fwd_mask = (lane % H2) < H

    def run_layer(whh):
        # Recurrence over time, fully unrolled (T is a static Python int).
        h = jnp.zeros((Bp, H2), jnp.float32)   # [h_fwd | h_bwd]
        c = jnp.zeros((Bp, H2), jnp.float32)   # [c_fwd | c_bwd]
        for s in range(T):
            r = T - 1 - s
            # One MXU op per step: combined hidden projection for both directions.
            g_hid = jnp.dot(h, whh, preferred_element_type=jnp.float32)
            # Precomputed input projections: fwd needs time s, bwd needs time r.
            xw_f = xw_sc[s * Bp:(s + 1) * Bp, :]
            xw_b = xw_sc[r * Bp:(r + 1) * Bp, :]
            gates = g_hid + jnp.where(fwd_mask, xw_f, xw_b)
            i = jax.nn.sigmoid(gates[:, 0 * H2:1 * H2])
            f = jax.nn.sigmoid(gates[:, 1 * H2:2 * H2])
            g = jnp.tanh(gates[:, 2 * H2:3 * H2])
            o = jax.nn.sigmoid(gates[:, 3 * H2:4 * H2])
            c = f * c + i * g
            h = o * jnp.tanh(c)
            # Layer output (in VMEM scratch): [h_fwd(t) | h_bwd(t)] per time t.
            seq_sc[s * Bp:(s + 1) * Bp, 0:H] = h[:, 0:H]
            seq_sc[r * Bp:(r + 1) * Bp, H:H2] = h[:, H:H2]

    # ---- layer 1: hoisted input projection, then recurrence ----
    xw_sc[...] = (jnp.dot(x_ref[...], wih1_ref[...],
                          preferred_element_type=jnp.float32) + b1_ref[...])
    run_layer(whh1_ref[...])

    # ---- layer 2: input is layer-1 output (already [fwd | bwd] per time) ----
    xw_sc[...] = (jnp.dot(seq_sc[...], wih2_ref[...],
                          preferred_element_type=jnp.float32) + b2_ref[...])
    run_layer(whh2_ref[...])

    # ---- head: ReLU -> Linear(2H,H) -> ReLU -> Linear(H,128-padded) -> Sigmoid ----
    feats = jnp.maximum(seq_sc[...], 0.0)
    mid = jnp.maximum(
        jnp.dot(feats, wh1_ref[...], preferred_element_type=jnp.float32)
        + bh1_ref[...], 0.0)
    y = jnp.dot(mid, wh2_ref[...], preferred_element_type=jnp.float32) + bh2_ref[...]
    out_ref[...] = jax.nn.sigmoid(y)   # dense (T*Bp, 128) store; column 0 is real


# ----------------------------------------------------------------------------
# One-time parameter preparation (transposes / gate interleave / direction fuse).
# ----------------------------------------------------------------------------
def _combine_direction_weights(fwd, bwd):
    """PyTorch-layout per-direction (W_ih(4H,D), W_hh(4H,H), b(4H,)) ->
    (W_ih_c(D,8H), W_hh_c(2H,8H), b_c(1,8H)) in interleaved-gate layout."""
    wih_f, whh_f, b_f = fwd
    wih_b, whh_b, b_b = bwd
    H4, D = wih_f.shape
    H = H4 // 4
    wih_c = jnp.zeros((D, 8 * H), jnp.float32)
    whh_c = jnp.zeros((2 * H, 8 * H), jnp.float32)
    b_c = jnp.zeros((8 * H,), jnp.float32)
    for g in range(4):
        for d, (wih, whh, b) in enumerate(((wih_f, whh_f, b_f),
                                           (wih_b, whh_b, b_b))):
            col = g * 2 * H + d * H
            wih_c = wih_c.at[:, col:col + H].set(wih[g * H:(g + 1) * H, :].T)
            whh_c = whh_c.at[d * H:(d + 1) * H, col:col + H].set(
                whh[g * H:(g + 1) * H, :].T)
            b_c = b_c.at[col:col + H].set(b[g * H:(g + 1) * H])
    return wih_c, whh_c, b_c[None, :]


def prepare_params(lstm_params, head_params, out_lanes=128):
    (wih1, whh1, b1c), (wih2, whh2, b2c) = [
        _combine_direction_weights(fwd, bwd) for fwd, bwd in lstm_params]
    w1, b1, w2, b2 = head_params
    H = w1.shape[0]
    wh1 = jnp.asarray(w1.T, jnp.float32)                 # (2H, H)
    bh1 = jnp.asarray(b1, jnp.float32)[None, :]          # (1, H)
    wh2 = jnp.zeros((H, out_lanes), jnp.float32).at[:, 0:1].set(w2.T)
    bh2 = jnp.zeros((1, out_lanes), jnp.float32).at[0, 0].set(b2[0])
    return (wih1, b1c, whh1, wih2, b2c, whh2, wh1, bh1, wh2, bh2)


# ----------------------------------------------------------------------------
# Forward pass wrapper (single pallas_call).
# ----------------------------------------------------------------------------
def nsmc_lstm_forward(x, prepared):
    """x: (B, T, input_size) batch_first (like PyTorch).  Returns (B, T, 1)."""
    wih1, b1c, whh1, wih2, b2c, whh2, wh1, bh1, wh2, bh2 = prepared
    B, T, D = x.shape
    H = whh1.shape[0] // 2
    out_lanes = wh2.shape[1]
    Bp = max(8, ((B + 7) // 8) * 8)                       # sublane-aligned batch

    x_p = jnp.pad(x, ((0, Bp - B), (0, 0), (0, 0)))
    x_tm = jnp.transpose(x_p, (1, 0, 2)).reshape(T * Bp, D)   # time-major, 2-D

    kernel = functools.partial(_fused_kernel, T=T, Bp=Bp, H=H)
    out2d = pl.pallas_call(
        kernel,
        out_shape=jax.ShapeDtypeStruct((T * Bp, out_lanes), jnp.float32),
        in_specs=[pl.BlockSpec(memory_space=pltpu.MemorySpace.VMEM)] * 11,
        out_specs=pl.BlockSpec(memory_space=pltpu.MemorySpace.VMEM),
        scratch_shapes=[pltpu.VMEM((T * Bp, 8 * H), jnp.float32),   # xw (reused)
                        pltpu.VMEM((T * Bp, 2 * H), jnp.float32)],  # layer output
    )(x_tm, wih1, b1c, whh1, wih2, b2c, whh2, wh1, bh1, wh2, bh2)

    out = out2d.reshape(T, Bp, out_lanes)[:, :B, 0:1]      # (T, B, 1)
    return jnp.transpose(out, (1, 0, 2))                   # (B, T, 1)


# ----------------------------------------------------------------------------
# Pure-JAX reference (for correctness check only).
# ----------------------------------------------------------------------------
def _ref_lstm_layer(x_tm, wih, whh, b):
    H = whh.shape[1]
    B = x_tm.shape[1]

    def step(carry, x_t):
        hh, cc = carry
        gates = x_t @ wih.T + hh @ whh.T + b
        i = jax.nn.sigmoid(gates[:, 0 * H:1 * H])
        f = jax.nn.sigmoid(gates[:, 1 * H:2 * H])
        g = jnp.tanh(gates[:, 2 * H:3 * H])
        o = jax.nn.sigmoid(gates[:, 3 * H:4 * H])
        cc = f * cc + i * g
        hh = o * jnp.tanh(cc)
        return (hh, cc), hh

    init = (jnp.zeros((B, H), jnp.float32), jnp.zeros((B, H), jnp.float32))
    _, hs = lax.scan(step, init, x_tm)
    return hs


def nsmc_lstm_reference(x, lstm_params, head_params):
    B, T, _ = x.shape
    h = jnp.transpose(x, (1, 0, 2))
    for (wih_f, whh_f, b_f), (wih_b, whh_b, b_b) in lstm_params:
        fwd = _ref_lstm_layer(h, wih_f, whh_f, b_f)
        bwd = _ref_lstm_layer(h[::-1], wih_b, whh_b, b_b)[::-1]
        h = jnp.concatenate([fwd, bwd], axis=-1)
    feats = jnp.transpose(h, (1, 0, 2)).reshape(B * T, -1)
    w1, b1, w2, b2 = head_params
    z = jnp.maximum(feats, 0.0)
    z = jnp.maximum(z @ w1.T + b1, 0.0)
    z = jax.nn.sigmoid(z @ w2.T + b2)
    return z.reshape(B, T, 1)


if __name__ == "__main__":
    # Small, shape-consistent configuration (hidden_size must equal input_size).
    INPUT_SIZE = 32
    HIDDEN_SIZE = 32
    B, T = 2, 8
    H = HIDDEN_SIZE

    key = jax.random.PRNGKey(0)

    def uniform(key, shape, scale):
        return jax.random.uniform(key, shape, jnp.float32, -scale, scale)

    k_lstm = 1.0 / jnp.sqrt(H)
    lstm_params = []
    for layer in range(2):
        in_size = INPUT_SIZE if layer == 0 else 2 * H
        dirs = []
        for _ in range(2):  # forward, backward
            key, k1, k2, k3, k4 = jax.random.split(key, 5)
            wih = uniform(k1, (4 * H, in_size), k_lstm)
            whh = uniform(k2, (4 * H, H), k_lstm)
            b = uniform(k3, (4 * H,), k_lstm) + uniform(k4, (4 * H,), k_lstm)
            dirs.append((wih, whh, b))
        lstm_params.append(tuple(dirs))

    key, k1, k2, k3, k4 = jax.random.split(key, 5)
    w1 = uniform(k1, (H, 2 * INPUT_SIZE), 1.0 / jnp.sqrt(2 * INPUT_SIZE))
    b1 = uniform(k2, (H,), 1.0 / jnp.sqrt(2 * INPUT_SIZE))
    w2 = uniform(k3, (1, H), 1.0 / jnp.sqrt(H))
    b2 = uniform(k4, (1,), 1.0 / jnp.sqrt(H))
    head_params = (w1, b1, w2, b2)

    key, kx = jax.random.split(key)
    x = jax.random.normal(kx, (B, T, INPUT_SIZE), jnp.float32)

    # One-time weight preparation (transposes / fusion baked in).
    prepared = jax.tree_util.tree_map(jax.block_until_ready,
                                      prepare_params(lstm_params, head_params))

    fwd_fn = jax.jit(nsmc_lstm_forward)
    out = jax.block_until_ready(fwd_fn(x, prepared))

    ref = jax.block_until_ready(nsmc_lstm_reference(x, lstm_params, head_params))
    assert out.shape == (B, T, 1)
    max_err = jnp.max(jnp.abs(out - ref))
    assert jnp.allclose(out, ref, atol=1e-4, rtol=1e-4), f"max abs err {max_err}"

    print("KERNEL_OK")
</pallas_src>

<mosaic_0001>
module attributes {stable_mosaic.version = 11 : i64} {
  func.func @_fused_kernel(%arg0: memref<64x32xf32, #tpu.memory_space<vmem>>, %arg1: memref<32x256xf32, #tpu.memory_space<vmem>>, %arg2: memref<1x256xf32, #tpu.memory_space<vmem>>, %arg3: memref<64x256xf32, #tpu.memory_space<vmem>>, %arg4: memref<64x256xf32, #tpu.memory_space<vmem>>, %arg5: memref<1x256xf32, #tpu.memory_space<vmem>>, %arg6: memref<64x256xf32, #tpu.memory_space<vmem>>, %arg7: memref<64x32xf32, #tpu.memory_space<vmem>>, %arg8: memref<1x32xf32, #tpu.memory_space<vmem>>, %arg9: memref<32x128xf32, #tpu.memory_space<vmem>>, %arg10: memref<1x128xf32, #tpu.memory_space<vmem>>, %arg11: memref<64x128xf32, #tpu.memory_space<vmem>>, %arg12: memref<64x256xf32, #tpu.memory_space<vmem>>, %arg13: memref<64x64xf32, #tpu.memory_space<vmem>>) attributes {dimension_semantics = [], scalar_prefetch = 0 : i64, scratch_operands = 2 : i64, tpu.core_type = #tpu.core_type<tc>} {
    %0 = tpu.iota {dimensions = array<i32: 1>} : vector<8x256xi32>
    %c64_i32 = arith.constant 64 : i32
    %c0_i32 = arith.constant 0 : i32
    %1 = arith.cmpi eq, %c64_i32, %c0_i32 : i32
    %c1_i32 = arith.constant 1 : i32
    %2 = arith.select %1, %c1_i32, %c64_i32 : i32
    %3 = vector.broadcast %2 : i32 to vector<8x256xi32>
    %4 = arith.remsi %0, %3 : vector<8x256xi32>
    %c0_i32_0 = arith.constant 0 : i32
    %5 = vector.broadcast %c0_i32_0 : i32 to vector<8x256xi32>
    %6 = arith.cmpi ne, %4, %5 : vector<8x256xi32>
    %c0_i32_1 = arith.constant 0 : i32
    %7 = vector.broadcast %c0_i32_1 : i32 to vector<8x256xi32>
    %8 = arith.cmpi slt, %4, %7 : vector<8x256xi32>
    %c0_i32_2 = arith.constant 0 : i32
    %9 = arith.cmpi slt, %2, %c0_i32_2 : i32
    %10 = vector.broadcast %9 : i1 to vector<8x256xi1>
    %11 = vector.broadcast %10 : vector<8x256xi1> to vector<8x256xi1>
    %12 = arith.xori %8, %11 : vector<8x256xi1>
    %13 = arith.andi %12, %6 : vector<8x256xi1>
    %14 = vector.broadcast %2 : i32 to vector<8x256xi32>
    %15 = arith.addi %4, %14 : vector<8x256xi32>
    %16 = arith.select %13, %15, %4 : vector<8x256xi1>, vector<8x256xi32>
    %c32_i32 = arith.constant 32 : i32
    %17 = vector.broadcast %c32_i32 : i32 to vector<8x256xi32>
    %18 = arith.cmpi slt, %16, %17 : vector<8x256xi32>
    %c0 = arith.constant 0 : index
    %c0_3 = arith.constant 0 : index
    %19 = vector.load %arg0[%c0, %c0_3] : memref<64x32xf32, #tpu.memory_space<vmem>>, vector<64x32xf32>
    %c0_4 = arith.constant 0 : index
    %c0_5 = arith.constant 0 : index
    %20 = vector.load %arg1[%c0_4, %c0_5] : memref<32x256xf32, #tpu.memory_space<vmem>>, vector<32x256xf32>
    %cst = arith.constant dense<0.000000e+00> : vector<64x256xf32>
    %21 = tpu.matmul %19, %20, %cst {dimension_numbers = #tpu.dot_dimension_numbers<[1], [0], [0], [1], [0, 0, 1, 1], [], []>} : vector<64x32xf32>, vector<32x256xf32>, vector<64x256xf32> -> vector<64x256xf32>
    %c0_6 = arith.constant 0 : index
    %c0_7 = arith.constant 0 : index
    %22 = vector.load %arg2[%c0_6, %c0_7] : memref<1x256xf32, #tpu.memory_space<vmem>>, vector<1x256xf32>
    %23 = vector.broadcast %22 : vector<1x256xf32> to vector<64x256xf32>
    %24 = arith.addf %21, %23 : vector<64x256xf32>
    %c0_8 = arith.constant 0 : index
    %c0_9 = arith.constant 0 : index
    %25 = vector.load %arg12[%c0_8, %c0_9] : memref<64x256xf32, #tpu.memory_space<vmem>>, vector<64x256xf32>
    tpu.vector_store %arg12[%c0_8, %c0_9], %24 {strides = array<i32>} : memref<64x256xf32, #tpu.memory_space<vmem>>, vector<64x256xf32>,
    %c0_10 = arith.constant 0 : index
    %c0_11 = arith.constant 0 : index
    %26 = vector.load %arg3[%c0_10, %c0_11] : memref<64x256xf32, #tpu.memory_space<vmem>>, vector<64x256xf32>
    %cst_12 = arith.constant 0.000000e+00 : f32
    %27 = vector.broadcast %cst_12 : f32 to vector<8x64xf32>
    %cst_13 = arith.constant 0.000000e+00 : f32
    %28 = vector.broadcast %cst_13 : f32 to vector<8x64xf32>
    %cst_14 = arith.constant dense<0.000000e+00> : vector<8x256xf32>
    %29 = tpu.matmul %27, %26, %cst_14 {dimension_numbers = #tpu.dot_dimension_numbers<[1], [0], [0], [1], [0, 0, 1, 1], [], []>} : vector<8x64xf32>, vector<64x256xf32>, vector<8x256xf32> -> vector<8x256xf32>
    %c0_15 = arith.constant 0 : index
    %c0_16 = arith.constant 0 : index
    %30 = vector.load %arg12[%c0_15, %c0_16] : memref<64x256xf32, #tpu.memory_space<vmem>>, vector<8x256xf32>
    %c56 = arith.constant 56 : index
    %c0_17 = arith.constant 0 : index
    %31 = vector.load %arg12[%c56, %c0_17] : memref<64x256xf32, #tpu.memory_space<vmem>>, vector<8x256xf32>
    %32 = arith.select %18, %30, %31 : vector<8x256xi1>, vector<8x256xf32>
    %33 = arith.addf %29, %32 : vector<8x256xf32>
    %34 = vector.extract_strided_slice %33 {offsets = [0, 0], sizes = [8, 64], strides = [1, 1]} : vector<8x256xf32> to vector<8x64xf32>
    %35 = arith.negf %34 : vector<8x64xf32>
    %36 = math.exp %35 : vector<8x64xf32>
    %cst_18 = arith.constant 1.000000e+00 : f32
    %37 = vector.broadcast %cst_18 : f32 to vector<8x64xf32>
    %38 = arith.addf %37, %36 : vector<8x64xf32>
    %39 = arith.divf %37, %38 : vector<8x64xf32>
    %40 = vector.extract_strided_slice %33 {offsets = [0, 64], sizes = [8, 64], strides = [1, 1]} : vector<8x256xf32> to vector<8x64xf32>
    %41 = arith.negf %40 : vector<8x64xf32>
    %42 = math.exp %41 : vector<8x64xf32>
    %cst_19 = arith.constant 1.000000e+00 : f32
    %43 = vector.broadcast %cst_19 : f32 to vector<8x64xf32>
    %44 = arith.addf %43, %42 : vector<8x64xf32>
    %45 = arith.divf %43, %44 : vector<8x64xf32>
    %46 = vector.extract_strided_slice %33 {offsets = [0, 128], sizes = [8, 64], strides = [1, 1]} : vector<8x256xf32> to vector<8x64xf32>
    %47 = math.tanh %46 : vector<8x64xf32>
    %48 = vector.extract_strided_slice %33 {offsets = [0, 192], sizes = [8, 64], strides = [1, 1]} : vector<8x256xf32> to vector<8x64xf32>
    %49 = arith.negf %48 : vector<8x64xf32>
    %50 = math.exp %49 : vector<8x64xf32>
    %cst_20 = arith.constant 1.000000e+00 : f32
    %51 = vector.broadcast %cst_20 : f32 to vector<8x64xf32>
    %52 = arith.addf %51, %50 : vector<8x64xf32>
    %53 = arith.divf %51, %52 : vector<8x64xf32>
    %54 = arith.mulf %45, %28 : vector<8x64xf32>
    %55 = arith.mulf %39, %47 : vector<8x64xf32>
    %56 = arith.addf %54, %55 : vector<8x64xf32>
    %57 = math.tanh %56 : vector<8x64xf32>
    %58 = arith.mulf %53, %57 : vector<8x64xf32>
    %59 = vector.extract_strided_slice %58 {offsets = [0, 0], sizes = [8, 32], strides = [1, 1]} : vector<8x64xf32> to vector<8x32xf32>
    %c0_21 = arith.constant 0 : index
    %c0_22 = arith.constant 0 : index
    %60 = vector.load %arg13[%c0_21, %c0_22] : memref<64x64xf32, #tpu.memory_space<vmem>>, vector<8x32xf32>
    tpu.vector_store %arg13[%c0_21, %c0_22], %59 {strides = array<i32>} : memref<64x64xf32, #tpu.memory_space<vmem>>, vector<8x32xf32>,
    %61 = vector.extract_strided_slice %58 {offsets = [0, 32], sizes = [8, 32], strides = [1, 1]} : vector<8x64xf32> to vector<8x32xf32>
    %c56_23 = arith.constant 56 : index
    %c32 = arith.constant 32 : index
    %62 = vector.load %arg13[%c56_23, %c32] : memref<64x64xf32, #tpu.memory_space<vmem>>, vector<8x32xf32>
    tpu.vector_store %arg13[%c56_23, %c32], %61 {strides = array<i32>} : memref<64x64xf32, #tpu.memory_space<vmem>>, vector<8x32xf32>,
    %cst_24 = arith.constant dense<0.000000e+00> : vector<8x256xf32>
    %63 = tpu.matmul %58, %26, %cst_24 {dimension_numbers = #tpu.dot_dimension_numbers<[1], [0], [0], [1], [0, 0, 1, 1], [], []>} : vector<8x64xf32>, vector<64x256xf32>, vector<8x256xf32> -> vector<8x256xf32>
    %c8 = arith.constant 8 : index
    %c0_25 = arith.constant 0 : index
    %64 = vector.load %arg12[%c8, %c0_25] : memref<64x256xf32, #tpu.memory_space<vmem>>, vector<8x256xf32>
    %c48 = arith.constant 48 : index
    %c0_26 = arith.constant 0 : index
    %65 = vector.load %arg12[%c48, %c0_26] : memref<64x256xf32, #tpu.memory_space<vmem>>, vector<8x256xf32>
    %66 = arith.select %18, %64, %65 : vector<8x256xi1>, vector<8x256xf32>
    %67 = arith.addf %63, %66 : vector<8x256xf32>
    %68 = vector.extract_strided_slice %67 {offsets = [0, 0], sizes = [8, 64], strides = [1, 1]} : vector<8x256xf32> to vector<8x64xf32>
    %69 = arith.negf %68 : vector<8x64xf32>
    %70 = math.exp %69 : vector<8x64xf32>
    %cst_27 = arith.constant 1.000000e+00 : f32
    %71 = vector.broadcast %cst_27 : f32 to vector<8x64xf32>
    %72 = arith.addf %71, %70 : vector<8x64xf32>
    %73 = arith.divf %71, %72 : vector<8x64xf32>
    %74 = vector.extract_strided_slice %67 {offsets = [0, 64], sizes = [8, 64], strides = [1, 1]} : vector<8x256xf32> to vector<8x64xf32>
    %75 = arith.negf %74 : vector<8x64xf32>
    %76 = math.exp %75 : vector<8x64xf32>
    %cst_28 = arith.constant 1.000000e+00 : f32
    %77 = vector.broadcast %cst_28 : f32 to vector<8x64xf32>
    %78 = arith.addf %77, %76 : vector<8x64xf32>
    %79 = arith.divf %77, %78 : vector<8x64xf32>
    %80 = vector.extract_strided_slice %67 {offsets = [0, 128], sizes = [8, 64], strides = [1, 1]} : vector<8x256xf32> to vector<8x64xf32>
    %81 = math.tanh %80 : vector<8x64xf32>
    %82 = vector.extract_strided_slice %67 {offsets = [0, 192], sizes = [8, 64], strides = [1, 1]} : vector<8x256xf32> to vector<8x64xf32>
    %83 = arith.negf %82 : vector<8x64xf32>
    %84 = math.exp %83 : vector<8x64xf32>
    %cst_29 = arith.constant 1.000000e+00 : f32
    %85 = vector.broadcast %cst_29 : f32 to vector<8x64xf32>
    %86 = arith.addf %85, %84 : vector<8x64xf32>
    %87 = arith.divf %85, %86 : vector<8x64xf32>
    %88 = arith.mulf %79, %56 : vector<8x64xf32>
    %89 = arith.mulf %73, %81 : vector<8x64xf32>
    %90 = arith.addf %88, %89 : vector<8x64xf32>
    %91 = math.tanh %90 : vector<8x64xf32>
    %92 = arith.mulf %87, %91 : vector<8x64xf32>
    %93 = vector.extract_strided_slice %92 {offsets = [0, 0], sizes = [8, 32], strides = [1, 1]} : vector<8x64xf32> to vector<8x32xf32>
    %c8_30 = arith.constant 8 : index
    %c0_31 = arith.constant 0 : index
    %94 = vector.load %arg13[%c8_30, %c0_31] : memref<64x64xf32, #tpu.memory_space<vmem>>, vector<8x32xf32>
    tpu.vector_store %arg13[%c8_30, %c0_31], %93 {strides = array<i32>} : memref<64x64xf32, #tpu.memory_space<vmem>>, vector<8x32xf32>,
    %95 = vector.extract_strided_slice %92 {offsets = [0, 32], sizes = [8, 32], strides = [1, 1]} : vector<8x64xf32> to vector<8x32xf32>
    %c48_32 = arith.constant 48 : index
    %c32_33 = arith.constant 32 : index
    %96 = vector.load %arg13[%c48_32, %c32_33] : memref<64x64xf32, #tpu.memory_space<vmem>>, vector<8x32xf32>
    tpu.vector_store %arg13[%c48_32, %c32_33], %95 {strides = array<i32>} : memref<64x64xf32, #tpu.memory_space<vmem>>, vector<8x32xf32>,
    %cst_34 = arith.constant dense<0.000000e+00> : vector<8x256xf32>
    %97 = tpu.matmul %92, %26, %cst_34 {dimension_numbers = #tpu.dot_dimension_numbers<[1], [0], [0], [1], [0, 0, 1, 1], [], []>} : vector<8x64xf32>, vector<64x256xf32>, vector<8x256xf32> -> vector<8x256xf32>
    %c16 = arith.constant 16 : index
    %c0_35 = arith.constant 0 : index
    %98 = vector.load %arg12[%c16, %c0_35] : memref<64x256xf32, #tpu.memory_space<vmem>>, vector<8x256xf32>
    %c40 = arith.constant 40 : index
    %c0_36 = arith.constant 0 : index
    %99 = vector.load %arg12[%c40, %c0_36] : memref<64x256xf32, #tpu.memory_space<vmem>>, vector<8x256xf32>
    %100 = arith.select %18, %98, %99 : vector<8x256xi1>, vector<8x256xf32>
    %101 = arith.addf %97, %100 : vector<8x256xf32>
    %102 = vector.extract_strided_slice %101 {offsets = [0, 0], sizes = [8, 64], strides = [1, 1]} : vector<8x256xf32> to vector<8x64xf32>
    %103 = arith.negf %102 : vector<8x64xf32>
    %104 = math.exp %103 : vector<8x64xf32>
    %cst_37 = arith.constant 1.000000e+00 : f32
    %105 = vector.broadcast %cst_37 : f32 to vector<8x64xf32>
    %106 = arith.addf %105, %104 : vector<8x64xf32>
    %107 = arith.divf %105, %106 : vector<8x64xf32>
    %108 = vector.extract_strided_slice %101 {offsets = [0, 64], sizes = [8, 64], strides = [1, 1]} : vector<8x256xf32> to vector<8x64xf32>
    %109 = arith.negf %108 : vector<8x64xf32>
    %110 = math.exp %109 : vector<8x64xf32>
    %cst_38 = arith.constant 1.000000e+00 : f32
    %111 = vector.broadcast %cst_38 : f32 to vector<8x64xf32>
    %112 = arith.addf %111, %110 : vector<8x64xf32>
    %113 = arith.divf %111, %112 : vector<8x64xf32>
    %114 = vector.extract_strided_slice %101 {offsets = [0, 128], sizes = [8, 64], strides = [1, 1]} : vector<8x256xf32> to vector<8x64xf32>
    %115 = math.tanh %114 : vector<8x64xf32>
    %116 = vector.extract_strided_slice %101 {offsets = [0, 192], sizes = [8, 64], strides = [1, 1]} : vector<8x256xf32> to vector<8x64xf32>
    %117 = arith.negf %116 : vector<8x64xf32>
    %118 = math.exp %117 : vector<8x64xf32>
    %cst_39 = arith.constant 1.000000e+00 : f32
    %119 = vector.broadcast %cst_39 : f32 to vector<8x64xf32>
    %120 = arith.addf %119, %118 : vector<8x64xf32>
    %121 = arith.divf %119, %120 : vector<8x64xf32>
    %122 = arith.mulf %113, %90 : vector<8x64xf32>
    %123 = arith.mulf %107, %115 : vector<8x64xf32>
    %124 = arith.addf %122, %123 : vector<8x64xf32>
    %125 = math.tanh %124 : vector<8x64xf32>
    %126 = arith.mulf %121, %125 : vector<8x64xf32>
    %127 = vector.extract_strided_slice %126 {offsets = [0, 0], sizes = [8, 32], strides = [1, 1]} : vector<8x64xf32> to vector<8x32xf32>
    %c16_40 = arith.constant 16 : index
    %c0_41 = arith.constant 0 : index
    %128 = vector.load %arg13[%c16_40, %c0_41] : memref<64x64xf32, #tpu.memory_space<vmem>>, vector<8x32xf32>
    tpu.vector_store %arg13[%c16_40, %c0_41], %127 {strides = array<i32>} : memref<64x64xf32, #tpu.memory_space<vmem>>, vector<8x32xf32>,
    %129 = vector.extract_strided_slice %126 {offsets = [0, 32], sizes = [8, 32], strides = [1, 1]} : vector<8x64xf32> to vector<8x32xf32>
    %c40_42 = arith.constant 40 : index
    %c32_43 = arith.constant 32 : index
    %130 = vector.load %arg13[%c40_42, %c32_43] : memref<64x64xf32, #tpu.memory_space<vmem>>, vector<8x32xf32>
    tpu.vector_store %arg13[%c40_42, %c32_43], %129 {strides = array<i32>} : memref<64x64xf32, #tpu.memory_space<vmem>>, vector<8x32xf32>,
    %cst_44 = arith.constant dense<0.000000e+00> : vector<8x256xf32>
    %131 = tpu.matmul %126, %26, %cst_44 {dimension_numbers = #tpu.dot_dimension_numbers<[1], [0], [0], [1], [0, 0, 1, 1], [], []>} : vector<8x64xf32>, vector<64x256xf32>, vector<8x256xf32> -> vector<8x256xf32>
    %c24 = arith.constant 24 : index
    %c0_45 = arith.constant 0 : index
    %132 = vector.load %arg12[%c24, %c0_45] : memref<64x256xf32, #tpu.memory_space<vmem>>, vector<8x256xf32>
    %c32_46 = arith.constant 32 : index
    %c0_47 = arith.constant 0 : index
    %133 = vector.load %arg12[%c32_46, %c0_47] : memref<64x256xf32, #tpu.memory_space<vmem>>, vector<8x256xf32>
    %134 = arith.select %18, %132, %133 : vector<8x256xi1>, vector<8x256xf32>
    %135 = arith.addf %131, %134 : vector<8x256xf32>
    %136 = vector.extract_strided_slice %135 {offsets = [0, 0], sizes = [8, 64], strides = [1, 1]} : vector<8x256xf32> to vector<8x64xf32>
    %137 = arith.negf %136 : vector<8x64xf32>
    %138 = math.exp %137 : vector<8x64xf32>
    %cst_48 = arith.constant 1.000000e+00 : f32
    %139 = vector.broadcast %cst_48 : f32 to vector<8x64xf32>
    %140 = arith.addf %139, %138 : vector<8x64xf32>
    %141 = arith.divf %139, %140 : vector<8x64xf32>
    %142 = vector.extract_strided_slice %135 {offsets = [0, 64], sizes = [8, 64], strides = [1, 1]} : vector<8x256xf32> to vector<8x64xf32>
    %143 = arith.negf %142 : vector<8x64xf32>
    %144 = math.exp %143 : vector<8x64xf32>
    %cst_49 = arith.constant 1.000000e+00 : f32
    %145 = vector.broadcast %cst_49 : f32 to vector<8x64xf32>
    %146 = arith.addf %145, %144 : vector<8x64xf32>
    %147 = arith.divf %145, %146 : vector<8x64xf32>
    %148 = vector.extract_strided_slice %135 {offsets = [0, 128], sizes = [8, 64], strides = [1, 1]} : vector<8x256xf32> to vector<8x64xf32>
    %149 = math.tanh %148 : vector<8x64xf32>
    %150 = vector.extract_strided_slice %135 {offsets = [0, 192], sizes = [8, 64], strides = [1, 1]} : vector<8x256xf32> to vector<8x64xf32>
    %151 = arith.negf %150 : vector<8x64xf32>
    %152 = math.exp %151 : vector<8x64xf32>
    %cst_50 = arith.constant 1.000000e+00 : f32
    %153 = vector.broadcast %cst_50 : f32 to vector<8x64xf32>
    %154 = arith.addf %153, %152 : vector<8x64xf32>
    %155 = arith.divf %153, %154 : vector<8x64xf32>
    %156 = arith.mulf %147, %124 : vector<8x64xf32>
    %157 = arith.mulf %141, %149 : vector<8x64xf32>
    %158 = arith.addf %156, %157 : vector<8x64xf32>
    %159 = math.tanh %158 : vector<8x64xf32>
    %160 = arith.mulf %155, %159 : vector<8x64xf32>
    %161 = vector.extract_strided_slice %160 {offsets = [0, 0], sizes = [8, 32], strides = [1, 1]} : vector<8x64xf32> to vector<8x32xf32>
    %c24_51 = arith.constant 24 : index
    %c0_52 = arith.constant 0 : index
    %162 = vector.load %arg13[%c24_51, %c0_52] : memref<64x64xf32, #tpu.memory_space<vmem>>, vector<8x32xf32>
    tpu.vector_store %arg13[%c24_51, %c0_52], %161 {strides = array<i32>} : memref<64x64xf32, #tpu.memory_space<vmem>>, vector<8x32xf32>,
    %163 = vector.extract_strided_slice %160 {offsets = [0, 32], sizes = [8, 32], strides = [1, 1]} : vector<8x64xf32> to vector<8x32xf32>
    %c32_53 = arith.constant 32 : index
    %c32_54 = arith.constant 32 : index
    %164 = vector.load %arg13[%c32_53, %c32_54] : memref<64x64xf32, #tpu.memory_space<vmem>>, vector<8x32xf32>
    tpu.vector_store %arg13[%c32_53, %c32_54], %163 {strides = array<i32>} : memref<64x64xf32, #tpu.memory_space<vmem>>, vector<8x32xf32>,
    %cst_55 = arith.constant dense<0.000000e+00> : vector<8x256xf32>
    %165 = tpu.matmul %160, %26, %cst_55 {dimension_numbers = #tpu.dot_dimension_numbers<[1], [0], [0], [1], [0, 0, 1, 1], [], []>} : vector<8x64xf32>, vector<64x256xf32>, vector<8x256xf32> -> vector<8x256xf32>
    %c32_56 = arith.constant 32 : index
    %c0_57 = arith.constant 0 : index
    %166 = vector.load %arg12[%c32_56, %c0_57] : memref<64x256xf32, #tpu.memory_space<vmem>>, vector<8x256xf32>
    %c24_58 = arith.constant 24 : index
    %c0_59 = arith.constant 0 : index
    %167 = vector.load %arg12[%c24_58, %c0_59] : memref<64x256xf32, #tpu.memory_space<vmem>>, vector<8x256xf32>
    %168 = arith.select %18, %166, %167 : vector<8x256xi1>, vector<8x256xf32>
    %169 = arith.addf %165, %168 : vector<8x256xf32>
    %170 = vector.extract_strided_slice %169 {offsets = [0, 0], sizes = [8, 64], strides = [1, 1]} : vector<8x256xf32> to vector<8x64xf32>
    %171 = arith.negf %170 : vector<8x64xf32>
    %172 = math.exp %171 : vector<8x64xf32>
    %cst_60 = arith.constant 1.000000e+00 : f32
    %173 = vector.broadcast %cst_60 : f32 to vector<8x64xf32>
    %174 = arith.addf %173, %172 : vector<8x64xf32>
    %175 = arith.divf %173, %174 : vector<8x64xf32>
    %176 = vector.extract_strided_slice %169 {offsets = [0, 64], sizes = [8, 64], strides = [1, 1]} : vector<8x256xf32> to vector<8x64xf32>
    %177 = arith.negf %176 : vector<8x64xf32>
    %178 = math.exp %177 : vector<8x64xf32>
    %cst_61 = arith.constant 1.000000e+00 : f32
    %179 = vector.broadcast %cst_61 : f32 to vector<8x64xf32>
    %180 = arith.addf %179, %178 : vector<8x64xf32>
    %181 = arith.divf %179, %180 : vector<8x64xf32>
    %182 = vector.extract_strided_slice %169 {offsets = [0, 128], sizes = [8, 64], strides = [1, 1]} : vector<8x256xf32> to vector<8x64xf32>
    %183 = math.tanh %182 : vector<8x64xf32>
    %184 = vector.extract_strided_slice %169 {offsets = [0, 192], sizes = [8, 64], strides = [1, 1]} : vector<8x256xf32> to vector<8x64xf32>
    %185 = arith.negf %184 : vector<8x64xf32>
    %186 = math.exp %185 : vector<8x64xf32>
    %cst_62 = arith.constant 1.000000e+00 : f32
    %187 = vector.broadcast %cst_62 : f32 to vector<8x64xf32>
    %188 = arith.addf %187, %186 : vector<8x64xf32>
    %189 = arith.divf %187, %188 : vector<8x64xf32>
    %190 = arith.mulf %181, %158 : vector<8x64xf32>
    %191 = arith.mulf %175, %183 : vector<8x64xf32>
    %192 = arith.addf %190, %191 : vector<8x64xf32>
    %193 = math.tanh %192 : vector<8x64xf32>
    %194 = arith.mulf %189, %193 : vector<8x64xf32>
    %195 = vector.extract_strided_slice %194 {offsets = [0, 0], sizes = [8, 32], strides = [1, 1]} : vector<8x64xf32> to vector<8x32xf32>
    %c32_63 = arith.constant 32 : index
    %c0_64 = arith.constant 0 : index
    %196 = vector.load %arg13[%c32_63, %c0_64] : memref<64x64xf32, #tpu.memory_space<vmem>>, vector<8x32xf32>
    tpu.vector_store %arg13[%c32_63, %c0_64], %195 {strides = array<i32>} : memref<64x64xf32, #tpu.memory_space<vmem>>, vector<8x32xf32>,
    %197 = vector.extract_strided_slice %194 {offsets = [0, 32], sizes = [8, 32], strides = [1, 1]} : vector<8x64xf32> to vector<8x32xf32>
    %c24_65 = arith.constant 24 : index
    %c32_66 = arith.constant 32 : index
    %198 = vector.load %arg13[%c24_65, %c32_66] : memref<64x64xf32, #tpu.memory_space<vmem>>, vector<8x32xf32>
    tpu.vector_store %arg13[%c24_65, %c32_66], %197 {strides = array<i32>} : memref<64x64xf32, #tpu.memory_space<vmem>>, vector<8x32xf32>,
    %cst_67 = arith.constant dense<0.000000e+00> : vector<8x256xf32>
    %199 = tpu.matmul %194, %26, %cst_67 {dimension_numbers = #tpu.dot_dimension_numbers<[1], [0], [0], [1], [0, 0, 1, 1], [], []>} : vector<8x64xf32>, vector<64x256xf32>, vector<8x256xf32> -> vector<8x256xf32>
    %c40_68 = arith.constant 40 : index
    %c0_69 = arith.constant 0 : index
    %200 = vector.load %arg12[%c40_68, %c0_69] : memref<64x256xf32, #tpu.memory_space<vmem>>, vector<8x256xf32>
    %c16_70 = arith.constant 16 : index
    %c0_71 = arith.constant 0 : index
    %201 = vector.load %arg12[%c16_70, %c0_71] : memref<64x256xf32, #tpu.memory_space<vmem>>, vector<8x256xf32>
    %202 = arith.select %18, %200, %201 : vector<8x256xi1>, vector<8x256xf32>
    %203 = arith.addf %199, %202 : vector<8x256xf32>
    %204 = vector.extract_strided_slice %203 {offsets = [0, 0], sizes = [8, 64], strides = [1, 1]} : vector<8x256xf32> to vector<8x64xf32>
    %205 = arith.negf %204 : vector<8x64xf32>
    %206 = math.exp %205 : vector<8x64xf32>
    %cst_72 = arith.constant 1.000000e+00 : f32
    %207 = vector.broadcast %cst_72 : f32 to vector<8x64xf32>
    %208 = arith.addf %207, %206 : vector<8x64xf32>
    %209 = arith.divf %207, %208 : vector<8x64xf32>
    %210 = vector.extract_strided_slice %203 {offsets = [0, 64], sizes = [8, 64], strides = [1, 1]} : vector<8x256xf32> to vector<8x64xf32>
    %211 = arith.negf %210 : vector<8x64xf32>
    %212 = math.exp %211 : vector<8x64xf32>
    %cst_73 = arith.constant 1.000000e+00 : f32
    %213 = vector.broadcast %cst_73 : f32 to vector<8x64xf32>
    %214 = arith.addf %213, %212 : vector<8x64xf32>
    %215 = arith.divf %213, %214 : vector<8x64xf32>
    %216 = vector.extract_strided_slice %203 {offsets = [0, 128], sizes = [8, 64], strides = [1, 1]} : vector<8x256xf32> to vector<8x64xf32>
    %217 = math.tanh %216 : vector<8x64xf32>
    %218 = vector.extract_strided_slice %203 {offsets = [0, 192], sizes = [8, 64], strides = [1, 1]} : vector<8x256xf32> to vector<8x64xf32>
    %219 = arith.negf %218 : vector<8x64xf32>
    %220 = math.exp %219 : vector<8x64xf32>
    %cst_74 = arith.constant 1.000000e+00 : f32
    %221 = vector.broadcast %cst_74 : f32 to vector<8x64xf32>
    %222 = arith.addf %221, %220 : vector<8x64xf32>
    %223 = arith.divf %221, %222 : vector<8x64xf32>
    %224 = arith.mulf %215, %192 : vector<8x64xf32>
    %225 = arith.mulf %209, %217 : vector<8x64xf32>
    %226 = arith.addf %224, %225 : vector<8x64xf32>
    %227 = math.tanh %226 : vector<8x64xf32>
    %228 = arith.mulf %223, %227 : vector<8x64xf32>
    %229 = vector.extract_strided_slice %228 {offsets = [0, 0], sizes = [8, 32], strides = [1, 1]} : vector<8x64xf32> to vector<8x32xf32>
    %c40_75 = arith.constant 40 : index
    %c0_76 = arith.constant 0 : index
    %230 = vector.load %arg13[%c40_75, %c0_76] : memref<64x64xf32, #tpu.memory_space<vmem>>, vector<8x32xf32>
    tpu.vector_store %arg13[%c40_75, %c0_76], %229 {strides = array<i32>} : memref<64x64xf32, #tpu.memory_space<vmem>>, vector<8x32xf32>,
    %231 = vector.extract_strided_slice %228 {offsets = [0, 32], sizes = [8, 32], strides = [1, 1]} : vector<8x64xf32> to vector<8x32xf32>
    %c16_77 = arith.constant 16 : index
    %c32_78 = arith.constant 32 : index
    %232 = vector.load %arg13[%c16_77, %c32_78] : memref<64x64xf32, #tpu.memory_space<vmem>>, vector<8x32xf32>
    tpu.vector_store %arg13[%c16_77, %c32_78], %231 {strides = array<i32>} : memref<64x64xf32, #tpu.memory_space<vmem>>, vector<8x32xf32>,
    %cst_79 = arith.constant dense<0.000000e+00> : vector<8x256xf32>
    %233 = tpu.matmul %228, %26, %cst_79 {dimension_numbers = #tpu.dot_dimension_numbers<[1], [0], [0], [1], [0, 0, 1, 1], [], []>} : vector<8x64xf32>, vector<64x256xf32>, vector<8x256xf32> -> vector<8x256xf32>
    %c48_80 = arith.constant 48 : index
    %c0_81 = arith.constant 0 : index
    %234 = vector.load %arg12[%c48_80, %c0_81] : memref<64x256xf32, #tpu.memory_space<vmem>>, vector<8x256xf32>
    %c8_82 = arith.constant 8 : index
    %c0_83 = arith.constant 0 : index
    %235 = vector.load %arg12[%c8_82, %c0_83] : memref<64x256xf32, #tpu.memory_space<vmem>>, vector<8x256xf32>
    %236 = arith.select %18, %234, %235 : vector<8x256xi1>, vector<8x256xf32>
    %237 = arith.addf %233, %236 : vector<8x256xf32>
    %238 = vector.extract_strided_slice %237 {offsets = [0, 0], sizes = [8, 64], strides = [1, 1]} : vector<8x256xf32> to vector<8x64xf32>
    %239 = arith.negf %238 : vector<8x64xf32>
    %240 = math.exp %239 : vector<8x64xf32>
    %cst_84 = arith.constant 1.000000e+00 : f32
    %241 = vector.broadcast %cst_84 : f32 to vector<8x64xf32>
    %242 = arith.addf %241, %240 : vector<8x64xf32>
    %243 = arith.divf %241, %242 : vector<8x64xf32>
    %244 = vector.extract_strided_slice %237 {offsets = [0, 64], sizes = [8, 64], strides = [1, 1]} : vector<8x256xf32> to vector<8x64xf32>
    %245 = arith.negf %244 : vector<8x64xf32>
    %246 = math.exp %245 : vector<8x64xf32>
    %cst_85 = arith.constant 1.000000e+00 : f32
    %247 = vector.broadcast %cst_85 : f32 to vector<8x64xf32>
    %248 = arith.addf %247, %246 : vector<8x64xf32>
    %249 = arith.divf %247, %248 : vector<8x64xf32>
    %250 = vector.extract_strided_slice %237 {offsets = [0, 128], sizes = [8, 64], strides = [1, 1]} : vector<8x256xf32> to vector<8x64xf32>
    %251 = math.tanh %250 : vector<8x64xf32>
    %252 = vector.extract_strided_slice %237 {offsets = [0, 192], sizes = [8, 64], strides = [1, 1]} : vector<8x256xf32> to vector<8x64xf32>
    %253 = arith.negf %252 : vector<8x64xf32>
    %254 = math.exp %253 : vector<8x64xf32>
    %cst_86 = arith.constant 1.000000e+00 : f32
    %255 = vector.broadcast %cst_86 : f32 to vector<8x64xf32>
    %256 = arith.addf %255, %254 : vector<8x64xf32>
    %257 = arith.divf %255, %256 : vector<8x64xf32>
    %258 = arith.mulf %249, %226 : vector<8x64xf32>
    %259 = arith.mulf %243, %251 : vector<8x64xf32>
    %260 = arith.addf %258, %259 : vector<8x64xf32>
    %261 = math.tanh %260 : vector<8x64xf32>
    %262 = arith.mulf %257, %261 : vector<8x64xf32>
    %263 = vector.extract_strided_slice %262 {offsets = [0, 0], sizes = [8, 32], strides = [1, 1]} : vector<8x64xf32> to vector<8x32xf32>
    %c48_87 = arith.constant 48 : index
    %c0_88 = arith.constant 0 : index
    %264 = vector.load %arg13[%c48_87, %c0_88] : memref<64x64xf32, #tpu.memory_space<vmem>>, vector<8x32xf32>
    tpu.vector_store %arg13[%c48_87, %c0_88], %263 {strides = array<i32>} : memref<64x64xf32, #tpu.memory_space<vmem>>, vector<8x32xf32>,
    %265 = vector.extract_strided_slice %262 {offsets = [0, 32], sizes = [8, 32], strides = [1, 1]} : vector<8x64xf32> to vector<8x32xf32>
    %c8_89 = arith.constant 8 : index
    %c32_90 = arith.constant 32 : index
    %266 = vector.load %arg13[%c8_89, %c32_90] : memref<64x64xf32, #tpu.memory_space<vmem>>, vector<8x32xf32>
    tpu.vector_store %arg13[%c8_89, %c32_90], %265 {strides = array<i32>} : memref<64x64xf32, #tpu.memory_space<vmem>>, vector<8x32xf32>,
    %cst_91 = arith.constant dense<0.000000e+00> : vector<8x256xf32>
    %267 = tpu.matmul %262, %26, %cst_91 {dimension_numbers = #tpu.dot_dimension_numbers<[1], [0], [0], [1], [0, 0, 1, 1], [], []>} : vector<8x64xf32>, vector<64x256xf32>, vector<8x256xf32> -> vector<8x256xf32>
    %c56_92 = arith.constant 56 : index
    %c0_93 = arith.constant 0 : index
    %268 = vector.load %arg12[%c56_92, %c0_93] : memref<64x256xf32, #tpu.memory_space<vmem>>, vector<8x256xf32>
    %c0_94 = arith.constant 0 : index
    %c0_95 = arith.constant 0 : index
    %269 = vector.load %arg12[%c0_94, %c0_95] : memref<64x256xf32, #tpu.memory_space<vmem>>, vector<8x256xf32>
    %270 = arith.select %18, %268, %269 : vector<8x256xi1>, vector<8x256xf32>
    %271 = arith.addf %267, %270 : vector<8x256xf32>
    %272 = vector.extract_strided_slice %271 {offsets = [0, 0], sizes = [8, 64], strides = [1, 1]} : vector<8x256xf32> to vector<8x64xf32>
    %273 = arith.negf %272 : vector<8x64xf32>
    %274 = math.exp %273 : vector<8x64xf32>
    %cst_96 = arith.constant 1.000000e+00 : f32
    %275 = vector.broadcast %cst_96 : f32 to vector<8x64xf32>
    %276 = arith.addf %275, %274 : vector<8x64xf32>
    %277 = arith.divf %275, %276 : vector<8x64xf32>
    %278 = vector.extract_strided_slice %271 {offsets = [0, 64], sizes = [8, 64], strides = [1, 1]} : vector<8x256xf32> to vector<8x64xf32>
    %279 = arith.negf %278 : vector<8x64xf32>
    %280 = math.exp %279 : vector<8x64xf32>
    %cst_97 = arith.constant 1.000000e+00 : f32
    %281 = vector.broadcast %cst_97 : f32 to vector<8x64xf32>
    %282 = arith.addf %281, %280 : vector<8x64xf32>
    %283 = arith.divf %281, %282 : vector<8x64xf32>
    %284 = vector.extract_strided_slice %271 {offsets = [0, 128], sizes = [8, 64], strides = [1, 1]} : vector<8x256xf32> to vector<8x64xf32>
    %285 = math.tanh %284 : vector<8x64xf32>
    %286 = vector.extract_strided_slice %271 {offsets = [0, 192], sizes = [8, 64], strides = [1, 1]} : vector<8x256xf32> to vector<8x64xf32>
    %287 = arith.negf %286 : vector<8x64xf32>
    %288 = math.exp %287 : vector<8x64xf32>
    %cst_98 = arith.constant 1.000000e+00 : f32
    %289 = vector.broadcast %cst_98 : f32 to vector<8x64xf32>
    %290 = arith.addf %289, %288 : vector<8x64xf32>
    %291 = arith.divf %289, %290 : vector<8x64xf32>
    %292 = arith.mulf %283, %260 : vector<8x64xf32>
    %293 = arith.mulf %277, %285 : vector<8x64xf32>
    %294 = arith.addf %292, %293 : vector<8x64xf32>
    %295 = math.tanh %294 : vector<8x64xf32>
    %296 = arith.mulf %291, %295 : vector<8x64xf32>
    %297 = vector.extract_strided_slice %296 {offsets = [0, 0], sizes = [8, 32], strides = [1, 1]} : vector<8x64xf32> to vector<8x32xf32>
    %c56_99 = arith.constant 56 : index
    %c0_100 = arith.constant 0 : index
    %298 = vector.load %arg13[%c56_99, %c0_100] : memref<64x64xf32, #tpu.memory_space<vmem>>, vector<8x32xf32>
    tpu.vector_store %arg13[%c56_99, %c0_100], %297 {strides = array<i32>} : memref<64x64xf32, #tpu.memory_space<vmem>>, vector<8x32xf32>,
    %299 = vector.extract_strided_slice %296 {offsets = [0, 32], sizes = [8, 32], strides = [1, 1]} : vector<8x64xf32> to vector<8x32xf32>
    %c0_101 = arith.constant 0 : index
    %c32_102 = arith.constant 32 : index
    %300 = vector.load %arg13[%c0_101, %c32_102] : memref<64x64xf32, #tpu.memory_space<vmem>>, vector<8x32xf32>
    tpu.vector_store %arg13[%c0_101, %c32_102], %299 {strides = array<i32>} : memref<64x64xf32, #tpu.memory_space<vmem>>, vector<8x32xf32>,
    %c0_103 = arith.constant 0 : index
    %c0_104 = arith.constant 0 : index
    %301 = vector.load %arg13[%c0_103, %c0_104] : memref<64x64xf32, #tpu.memory_space<vmem>>, vector<64x64xf32>
    %c0_105 = arith.constant 0 : index
    %c0_106 = arith.constant 0 : index
    %302 = vector.load %arg4[%c0_105, %c0_106] : memref<64x256xf32, #tpu.memory_space<vmem>>, vector<64x256xf32>
    %cst_107 = arith.constant dense<0.000000e+00> : vector<64x256xf32>
    %303 = tpu.matmul %301, %302, %cst_107 {dimension_numbers = #tpu.dot_dimension_numbers<[1], [0], [0], [1], [0, 0, 1, 1], [], []>} : vector<64x64xf32>, vector<64x256xf32>, vector<64x256xf32> -> vector<64x256xf32>
    %c0_108 = arith.constant 0 : index
    %c0_109 = arith.constant 0 : index
    %304 = vector.load %arg5[%c0_108, %c0_109] : memref<1x256xf32, #tpu.memory_space<vmem>>, vector<1x256xf32>
    %305 = vector.broadcast %304 : vector<1x256xf32> to vector<64x256xf32>
    %306 = arith.addf %303, %305 : vector<64x256xf32>
    %c0_110 = arith.constant 0 : index
    %c0_111 = arith.constant 0 : index
    %307 = vector.load %arg12[%c0_110, %c0_111] : memref<64x256xf32, #tpu.memory_space<vmem>>, vector<64x256xf32>
    tpu.vector_store %arg12[%c0_110, %c0_111], %306 {strides = array<i32>} : memref<64x256xf32, #tpu.memory_space<vmem>>, vector<64x256xf32>,
    %c0_112 = arith.constant 0 : index
    %c0_113 = arith.constant 0 : index
    %308 = vector.load %arg6[%c0_112, %c0_113] : memref<64x256xf32, #tpu.memory_space<vmem>>, vector<64x256xf32>
    %cst_114 = arith.constant 0.000000e+00 : f32
    %309 = vector.broadcast %cst_114 : f32 to vector<8x64xf32>
    %cst_115 = arith.constant 0.000000e+00 : f32
    %310 = vector.broadcast %cst_115 : f32 to vector<8x64xf32>
    %cst_116 = arith.constant dense<0.000000e+00> : vector<8x256xf32>
    %311 = tpu.matmul %309, %308, %cst_116 {dimension_numbers = #tpu.dot_dimension_numbers<[1], [0], [0], [1], [0, 0, 1, 1], [], []>} : vector<8x64xf32>, vector<64x256xf32>, vector<8x256xf32> -> vector<8x256xf32>
    %c0_117 = arith.constant 0 : index
    %c0_118 = arith.constant 0 : index
    %312 = vector.load %arg12[%c0_117, %c0_118] : memref<64x256xf32, #tpu.memory_space<vmem>>, vector<8x256xf32>
    %c56_119 = arith.constant 56 : index
    %c0_120 = arith.constant 0 : index
    %313 = vector.load %arg12[%c56_119, %c0_120] : memref<64x256xf32, #tpu.memory_space<vmem>>, vector<8x256xf32>
    %314 = arith.select %18, %312, %313 : vector<8x256xi1>, vector<8x256xf32>
    %315 = arith.addf %311, %314 : vector<8x256xf32>
    %316 = vector.extract_strided_slice %315 {offsets = [0, 0], sizes = [8, 64], strides = [1, 1]} : vector<8x256xf32> to vector<8x64xf32>
    %317 = arith.negf %316 : vector<8x64xf32>
    %318 = math.exp %317 : vector<8x64xf32>
    %cst_121 = arith.constant 1.000000e+00 : f32
    %319 = vector.broadcast %cst_121 : f32 to vector<8x64xf32>
    %320 = arith.addf %319, %318 : vector<8x64xf32>
    %321 = arith.divf %319, %320 : vector<8x64xf32>
    %322 = vector.extract_strided_slice %315 {offsets = [0, 64], sizes = [8, 64], strides = [1, 1]} : vector<8x256xf32> to vector<8x64xf32>
    %323 = arith.negf %322 : vector<8x64xf32>
    %324 = math.exp %323 : vector<8x64xf32>
    %cst_122 = arith.constant 1.000000e+00 : f32
    %325 = vector.broadcast %cst_122 : f32 to vector<8x64xf32>
    %326 = arith.addf %325, %324 : vector<8x64xf32>
    %327 = arith.divf %325, %326 : vector<8x64xf32>
    %328 = vector.extract_strided_slice %315 {offsets = [0, 128], sizes = [8, 64], strides = [1, 1]} : vector<8x256xf32> to vector<8x64xf32>
    %329 = math.tanh %328 : vector<8x64xf32>
    %330 = vector.extract_strided_slice %315 {offsets = [0, 192], sizes = [8, 64], strides = [1, 1]} : vector<8x256xf32> to vector<8x64xf32>
    %331 = arith.negf %330 : vector<8x64xf32>
    %332 = math.exp %331 : vector<8x64xf32>
    %cst_123 = arith.constant 1.000000e+00 : f32
    %333 = vector.broadcast %cst_123 : f32 to vector<8x64xf32>
    %334 = arith.addf %333, %332 : vector<8x64xf32>
    %335 = arith.divf %333, %334 : vector<8x64xf32>
    %336 = arith.mulf %327, %310 : vector<8x64xf32>
    %337 = arith.mulf %321, %329 : vector<8x64xf32>
    %338 = arith.addf %336, %337 : vector<8x64xf32>
    %339 = math.tanh %338 : vector<8x64xf32>
    %340 = arith.mulf %335, %339 : vector<8x64xf32>
    %341 = vector.extract_strided_slice %340 {offsets = [0, 0], sizes = [8, 32], strides = [1, 1]} : vector<8x64xf32> to vector<8x32xf32>
    %c0_124 = arith.constant 0 : index
    %c0_125 = arith.constant 0 : index
    %342 = vector.load %arg13[%c0_124, %c0_125] : memref<64x64xf32, #tpu.memory_space<vmem>>, vector<8x32xf32>
    tpu.vector_store %arg13[%c0_124, %c0_125], %341 {strides = array<i32>} : memref<64x64xf32, #tpu.memory_space<vmem>>, vector<8x32xf32>,
    %343 = vector.extract_strided_slice %340 {offsets = [0, 32], sizes = [8, 32], strides = [1, 1]} : vector<8x64xf32> to vector<8x32xf32>
    %c56_126 = arith.constant 56 : index
    %c32_127 = arith.constant 32 : index
    %344 = vector.load %arg13[%c56_126, %c32_127] : memref<64x64xf32, #tpu.memory_space<vmem>>, vector<8x32xf32>
    tpu.vector_store %arg13[%c56_126, %c32_127], %343 {strides = array<i32>} : memref<64x64xf32, #tpu.memory_space<vmem>>, vector<8x32xf32>,
    %cst_128 = arith.constant dense<0.000000e+00> : vector<8x256xf32>
    %345 = tpu.matmul %340, %308, %cst_128 {dimension_numbers = #tpu.dot_dimension_numbers<[1], [0], [0], [1], [0, 0, 1, 1], [], []>} : vector<8x64xf32>, vector<64x256xf32>, vector<8x256xf32> -> vector<8x256xf32>
    %c8_129 = arith.constant 8 : index
    %c0_130 = arith.constant 0 : index
    %346 = vector.load %arg12[%c8_129, %c0_130] : memref<64x256xf32, #tpu.memory_space<vmem>>, vector<8x256xf32>
    %c48_131 = arith.constant 48 : index
    %c0_132 = arith.constant 0 : index
    %347 = vector.load %arg12[%c48_131, %c0_132] : memref<64x256xf32, #tpu.memory_space<vmem>>, vector<8x256xf32>
    %348 = arith.select %18, %346, %347 : vector<8x256xi1>, vector<8x256xf32>
    %349 = arith.addf %345, %348 : vector<8x256xf32>
    %350 = vector.extract_strided_slice %349 {offsets = [0, 0], sizes = [8, 64], strides = [1, 1]} : vector<8x256xf32> to vector<8x64xf32>
    %351 = arith.negf %350 : vector<8x64xf32>
    %352 = math.exp %351 : vector<8x64xf32>
    %cst_133 = arith.constant 1.000000e+00 : f32
    %353 = vector.broadcast %cst_133 : f32 to vector<8x64xf32>
    %354 = arith.addf %353, %352 : vector<8x64xf32>
    %355 = arith.divf %353, %354 : vector<8x64xf32>
    %356 = vector.extract_strided_slice %349 {offsets = [0, 64], sizes = [8, 64], strides = [1, 1]} : vector<8x256xf32> to vector<8x64xf32>
    %357 = arith.negf %356 : vector<8x64xf32>
    %358 = math.exp %357 : vector<8x64xf32>
    %cst_134 = arith.constant 1.000000e+00 : f32
    %359 = vector.broadcast %cst_134 : f32 to vector<8x64xf32>
    %360 = arith.addf %359, %358 : vector<8x64xf32>
    %361 = arith.divf %359, %360 : vector<8x64xf32>
    %362 = vector.extract_strided_slice %349 {offsets = [0, 128], sizes = [8, 64], strides = [1, 1]} : vector<8x256xf32> to vector<8x64xf32>
    %363 = math.tanh %362 : vector<8x64xf32>
    %364 = vector.extract_strided_slice %349 {offsets = [0, 192], sizes = [8, 64], strides = [1, 1]} : vector<8x256xf32> to vector<8x64xf32>
    %365 = arith.negf %364 : vector<8x64xf32>
    %366 = math.exp %365 : vector<8x64xf32>
    %cst_135 = arith.constant 1.000000e+00 : f32
    %367 = vector.broadcast %cst_135 : f32 to vector<8x64xf32>
    %368 = arith.addf %367, %366 : vector<8x64xf32>
    %369 = arith.divf %367, %368 : vector<8x64xf32>
    %370 = arith.mulf %361, %338 : vector<8x64xf32>
    %371 = arith.mulf %355, %363 : vector<8x64xf32>
    %372 = arith.addf %370, %371 : vector<8x64xf32>
    %373 = math.tanh %372 : vector<8x64xf32>
    %374 = arith.mulf %369, %373 : vector<8x64xf32>
    %375 = vector.extract_strided_slice %374 {offsets = [0, 0], sizes = [8, 32], strides = [1, 1]} : vector<8x64xf32> to vector<8x32xf32>
    %c8_136 = arith.constant 8 : index
    %c0_137 = arith.constant 0 : index
    %376 = vector.load %arg13[%c8_136, %c0_137] : memref<64x64xf32, #tpu.memory_space<vmem>>, vector<8x32xf32>
    tpu.vector_store %arg13[%c8_136, %c0_137], %375 {strides = array<i32>} : memref<64x64xf32, #tpu.memory_space<vmem>>, vector<8x32xf32>,
    %377 = vector.extract_strided_slice %374 {offsets = [0, 32], sizes = [8, 32], strides = [1, 1]} : vector<8x64xf32> to vector<8x32xf32>
    %c48_138 = arith.constant 48 : index
    %c32_139 = arith.constant 32 : index
    %378 = vector.load %arg13[%c48_138, %c32_139] : memref<64x64xf32, #tpu.memory_space<vmem>>, vector<8x32xf32>
    tpu.vector_store %arg13[%c48_138, %c32_139], %377 {strides = array<i32>} : memref<64x64xf32, #tpu.memory_space<vmem>>, vector<8x32xf32>,
    %cst_140 = arith.constant dense<0.000000e+00> : vector<8x256xf32>
    %379 = tpu.matmul %374, %308, %cst_140 {dimension_numbers = #tpu.dot_dimension_numbers<[1], [0], [0], [1], [0, 0, 1, 1], [], []>} : vector<8x64xf32>, vector<64x256xf32>, vector<8x256xf32> -> vector<8x256xf32>
    %c16_141 = arith.constant 16 : index
    %c0_142 = arith.constant 0 : index
    %380 = vector.load %arg12[%c16_141, %c0_142] : memref<64x256xf32, #tpu.memory_space<vmem>>, vector<8x256xf32>
    %c40_143 = arith.constant 40 : index
    %c0_144 = arith.constant 0 : index
    %381 = vector.load %arg12[%c40_143, %c0_144] : memref<64x256xf32, #tpu.memory_space<vmem>>, vector<8x256xf32>
    %382 = arith.select %18, %380, %381 : vector<8x256xi1>, vector<8x256xf32>
    %383 = arith.addf %379, %382 : vector<8x256xf32>
    %384 = vector.extract_strided_slice %383 {offsets = [0, 0], sizes = [8, 64], strides = [1, 1]} : vector<8x256xf32> to vector<8x64xf32>
    %385 = arith.negf %384 : vector<8x64xf32>
    %386 = math.exp %385 : vector<8x64xf32>
    %cst_145 = arith.constant 1.000000e+00 : f32
    %387 = vector.broadcast %cst_145 : f32 to vector<8x64xf32>
    %388 = arith.addf %387, %386 : vector<8x64xf32>
    %389 = arith.divf %387, %388 : vector<8x64xf32>
    %390 = vector.extract_strided_slice %383 {offsets = [0, 64], sizes = [8, 64], strides = [1, 1]} : vector<8x256xf32> to vector<8x64xf32>
    %391 = arith.negf %390 : vector<8x64xf32>
    %392 = math.exp %391 : vector<8x64xf32>
    %cst_146 = arith.constant 1.000000e+00 : f32
    %393 = vector.broadcast %cst_146 : f32 to vector<8x64xf32>
    %394 = arith.addf %393, %392 : vector<8x64xf32>
    %395 = arith.divf %393, %394 : vector<8x64xf32>
    %396 = vector.extract_strided_slice %383 {offsets = [0, 128], sizes = [8, 64], strides = [1, 1]} : vector<8x256xf32> to vector<8x64xf32>
    %397 = math.tanh %396 : vector<8x64xf32>
    %398 = vector.extract_strided_slice %383 {offsets = [0, 192], sizes = [8, 64], strides = [1, 1]} : vector<8x256xf32> to vector<8x64xf32>
    %399 = arith.negf %398 : vector<8x64xf32>
    %400 = math.exp %399 : vector<8x64xf32>
    %cst_147 = arith.constant 1.000000e+00 : f32
    %401 = vector.broadcast %cst_147 : f32 to vector<8x64xf32>
    %402 = arith.addf %401, %400 : vector<8x64xf32>
    %403 = arith.divf %401, %402 : vector<8x64xf32>
    %404 = arith.mulf %395, %372 : vector<8x64xf32>
    %405 = arith.mulf %389, %397 : vector<8x64xf32>
    %406 = arith.addf %404, %405 : vector<8x64xf32>
    %407 = math.tanh %406 : vector<8x64xf32>
    %408 = arith.mulf %403, %407 : vector<8x64xf32>
    %409 = vector.extract_strided_slice %408 {offsets = [0, 0], sizes = [8, 32], strides = [1, 1]} : vector<8x64xf32> to vector<8x32xf32>
    %c16_148 = arith.constant 16 : index
    %c0_149 = arith.constant 0 : index
    %410 = vector.load %arg13[%c16_148, %c0_149] : memref<64x64xf32, #tpu.memory_space<vmem>>, vector<8x32xf32>
    tpu.vector_store %arg13[%c16_148, %c0_149], %409 {strides = array<i32>} : memref<64x64xf32, #tpu.memory_space<vmem>>, vector<8x32xf32>,
    %411 = vector.extract_strided_slice %408 {offsets = [0, 32], sizes = [8, 32], strides = [1, 1]} : vector<8x64xf32> to vector<8x32xf32>
    %c40_150 = arith.constant 40 : index
    %c32_151 = arith.constant 32 : index
    %412 = vector.load %arg13[%c40_150, %c32_151] : memref<64x64xf32, #tpu.memory_space<vmem>>, vector<8x32xf32>
    tpu.vector_store %arg13[%c40_150, %c32_151], %411 {strides = array<i32>} : memref<64x64xf32, #tpu.memory_space<vmem>>, vector<8x32xf32>,
    %cst_152 = arith.constant dense<0.000000e+00> : vector<8x256xf32>
    %413 = tpu.matmul %408, %308, %cst_152 {dimension_numbers = #tpu.dot_dimension_numbers<[1], [0], [0], [1], [0, 0, 1, 1], [], []>} : vector<8x64xf32>, vector<64x256xf32>, vector<8x256xf32> -> vector<8x256xf32>
    %c24_153 = arith.constant 24 : index
    %c0_154 = arith.constant 0 : index
    %414 = vector.load %arg12[%c24_153, %c0_154] : memref<64x256xf32, #tpu.memory_space<vmem>>, vector<8x256xf32>
    %c32_155 = arith.constant 32 : index
    %c0_156 = arith.constant 0 : index
    %415 = vector.load %arg12[%c32_155, %c0_156] : memref<64x256xf32, #tpu.memory_space<vmem>>, vector<8x256xf32>
    %416 = arith.select %18, %414, %415 : vector<8x256xi1>, vector<8x256xf32>
    %417 = arith.addf %413, %416 : vector<8x256xf32>
    %418 = vector.extract_strided_slice %417 {offsets = [0, 0], sizes = [8, 64], strides = [1, 1]} : vector<8x256xf32> to vector<8x64xf32>
    %419 = arith.negf %418 : vector<8x64xf32>
    %420 = math.exp %419 : vector<8x64xf32>
    %cst_157 = arith.constant 1.000000e+00 : f32
    %421 = vector.broadcast %cst_157 : f32 to vector<8x64xf32>
    %422 = arith.addf %421, %420 : vector<8x64xf32>
    %423 = arith.divf %421, %422 : vector<8x64xf32>
    %424 = vector.extract_strided_slice %417 {offsets = [0, 64], sizes = [8, 64], strides = [1, 1]} : vector<8x256xf32> to vector<8x64xf32>
    %425 = arith.negf %424 : vector<8x64xf32>
    %426 = math.exp %425 : vector<8x64xf32>
    %cst_158 = arith.constant 1.000000e+00 : f32
    %427 = vector.broadcast %cst_158 : f32 to vector<8x64xf32>
    %428 = arith.addf %427, %426 : vector<8x64xf32>
    %429 = arith.divf %427, %428 : vector<8x64xf32>
    %430 = vector.extract_strided_slice %417 {offsets = [0, 128], sizes = [8, 64], strides = [1, 1]} : vector<8x256xf32> to vector<8x64xf32>
    %431 = math.tanh %430 : vector<8x64xf32>
    %432 = vector.extract_strided_slice %417 {offsets = [0, 192], sizes = [8, 64], strides = [1, 1]} : vector<8x256xf32> to vector<8x64xf32>
    %433 = arith.negf %432 : vector<8x64xf32>
    %434 = math.exp %433 : vector<8x64xf32>
    %cst_159 = arith.constant 1.000000e+00 : f32
    %435 = vector.broadcast %cst_159 : f32 to vector<8x64xf32>
    %436 = arith.addf %435, %434 : vector<8x64xf32>
    %437 = arith.divf %435, %436 : vector<8x64xf32>
    %438 = arith.mulf %429, %406 : vector<8x64xf32>
    %439 = arith.mulf %423, %431 : vector<8x64xf32>
    %440 = arith.addf %438, %439 : vector<8x64xf32>
    %441 = math.tanh %440 : vector<8x64xf32>
    %442 = arith.mulf %437, %441 : vector<8x64xf32>
    %443 = vector.extract_strided_slice %442 {offsets = [0, 0], sizes = [8, 32], strides = [1, 1]} : vector<8x64xf32> to vector<8x32xf32>
    %c24_160 = arith.constant 24 : index
    %c0_161 = arith.constant 0 : index
    %444 = vector.load %arg13[%c24_160, %c0_161] : memref<64x64xf32, #tpu.memory_space<vmem>>, vector<8x32xf32>
    tpu.vector_store %arg13[%c24_160, %c0_161], %443 {strides = array<i32>} : memref<64x64xf32, #tpu.memory_space<vmem>>, vector<8x32xf32>,
    %445 = vector.extract_strided_slice %442 {offsets = [0, 32], sizes = [8, 32], strides = [1, 1]} : vector<8x64xf32> to vector<8x32xf32>
    %c32_162 = arith.constant 32 : index
    %c32_163 = arith.constant 32 : index
    %446 = vector.load %arg13[%c32_162, %c32_163] : memref<64x64xf32, #tpu.memory_space<vmem>>, vector<8x32xf32>
    tpu.vector_store %arg13[%c32_162, %c32_163], %445 {strides = array<i32>} : memref<64x64xf32, #tpu.memory_space<vmem>>, vector<8x32xf32>,
    %cst_164 = arith.constant dense<0.000000e+00> : vector<8x256xf32>
    %447 = tpu.matmul %442, %308, %cst_164 {dimension_numbers = #tpu.dot_dimension_numbers<[1], [0], [0], [1], [0, 0, 1, 1], [], []>} : vector<8x64xf32>, vector<64x256xf32>, vector<8x256xf32> -> vector<8x256xf32>
    %c32_165 = arith.constant 32 : index
    %c0_166 = arith.constant 0 : index
    %448 = vector.load %arg12[%c32_165, %c0_166] : memref<64x256xf32, #tpu.memory_space<vmem>>, vector<8x256xf32>
    %c24_167 = arith.constant 24 : index
    %c0_168 = arith.constant 0 : index
    %449 = vector.load %arg12[%c24_167, %c0_168] : memref<64x256xf32, #tpu.memory_space<vmem>>, vector<8x256xf32>
    %450 = arith.select %18, %448, %449 : vector<8x256xi1>, vector<8x256xf32>
    %451 = arith.addf %447, %450 : vector<8x256xf32>
    %452 = vector.extract_strided_slice %451 {offsets = [0, 0], sizes = [8, 64], strides = [1, 1]} : vector<8x256xf32> to vector<8x64xf32>
    %453 = arith.negf %452 : vector<8x64xf32>
    %454 = math.exp %453 : vector<8x64xf32>
    %cst_169 = arith.constant 1.000000e+00 : f32
    %455 = vector.broadcast %cst_169 : f32 to vector<8x64xf32>
    %456 = arith.addf %455, %454 : vector<8x64xf32>
    %457 = arith.divf %455, %456 : vector<8x64xf32>
    %458 = vector.extract_strided_slice %451 {offsets = [0, 64], sizes = [8, 64], strides = [1, 1]} : vector<8x256xf32> to vector<8x64xf32>
    %459 = arith.negf %458 : vector<8x64xf32>
    %460 = math.exp %459 : vector<8x64xf32>
    %cst_170 = arith.constant 1.000000e+00 : f32
    %461 = vector.broadcast %cst_170 : f32 to vector<8x64xf32>
    %462 = arith.addf %461, %460 : vector<8x64xf32>
    %463 = arith.divf %461, %462 : vector<8x64xf32>
    %464 = vector.extract_strided_slice %451 {offsets = [0, 128], sizes = [8, 64], strides = [1, 1]} : vector<8x256xf32> to vector<8x64xf32>
    %465 = math.tanh %464 : vector<8x64xf32>
    %466 = vector.extract_strided_slice %451 {offsets = [0, 192], sizes = [8, 64], strides = [1, 1]} : vector<8x256xf32> to vector<8x64xf32>
    %467 = arith.negf %466 : vector<8x64xf32>
    %468 = math.exp %467 : vector<8x64xf32>
    %cst_171 = arith.constant 1.000000e+00 : f32
    %469 = vector.broadcast %cst_171 : f32 to vector<8x64xf32>
    %470 = arith.addf %469, %468 : vector<8x64xf32>
    %471 = arith.divf %469, %470 : vector<8x64xf32>
    %472 = arith.mulf %463, %440 : vector<8x64xf32>
    %473 = arith.mulf %457, %465 : vector<8x64xf32>
    %474 = arith.addf %472, %473 : vector<8x64xf32>
    %475 = math.tanh %474 : vector<8x64xf32>
    %476 = arith.mulf %471, %475 : vector<8x64xf32>
    %477 = vector.extract_strided_slice %476 {offsets = [0, 0], sizes = [8, 32], strides = [1, 1]} : vector<8x64xf32> to vector<8x32xf32>
    %c32_172 = arith.constant 32 : index
    %c0_173 = arith.constant 0 : index
    %478 = vector.load %arg13[%c32_172, %c0_173] : memref<64x64xf32, #tpu.memory_space<vmem>>, vector<8x32xf32>
    tpu.vector_store %arg13[%c32_172, %c0_173], %477 {strides = array<i32>} : memref<64x64xf32, #tpu.memory_space<vmem>>, vector<8x32xf32>,
    %479 = vector.extract_strided_slice %476 {offsets = [0, 32], sizes = [8, 32], strides = [1, 1]} : vector<8x64xf32> to vector<8x32xf32>
    %c24_174 = arith.constant 24 : index
    %c32_175 = arith.constant 32 : index
    %480 = vector.load %arg13[%c24_174, %c32_175] : memref<64x64xf32, #tpu.memory_space<vmem>>, vector<8x32xf32>
    tpu.vector_store %arg13[%c24_174, %c32_175], %479 {strides = array<i32>} : memref<64x64xf32, #tpu.memory_space<vmem>>, vector<8x32xf32>,
    %cst_176 = arith.constant dense<0.000000e+00> : vector<8x256xf32>
    %481 = tpu.matmul %476, %308, %cst_176 {dimension_numbers = #tpu.dot_dimension_numbers<[1], [0], [0], [1], [0, 0, 1, 1], [], []>} : vector<8x64xf32>, vector<64x256xf32>, vector<8x256xf32> -> vector<8x256xf32>
    %c40_177 = arith.constant 40 : index
    %c0_178 = arith.constant 0 : index
    %482 = vector.load %arg12[%c40_177, %c0_178] : memref<64x256xf32, #tpu.memory_space<vmem>>, vector<8x256xf32>
    %c16_179 = arith.constant 16 : index
    %c0_180 = arith.constant 0 : index
    %483 = vector.load %arg12[%c16_179, %c0_180] : memref<64x256xf32, #tpu.memory_space<vmem>>, vector<8x256xf32>
    %484 = arith.select %18, %482, %483 : vector<8x256xi1>, vector<8x256xf32>
    %485 = arith.addf %481, %484 : vector<8x256xf32>
    %486 = vector.extract_strided_slice %485 {offsets = [0, 0], sizes = [8, 64], strides = [1, 1]} : vector<8x256xf32> to vector<8x64xf32>
    %487 = arith.negf %486 : vector<8x64xf32>
    %488 = math.exp %487 : vector<8x64xf32>
    %cst_181 = arith.constant 1.000000e+00 : f32
    %489 = vector.broadcast %cst_181 : f32 to vector<8x64xf32>
    %490 = arith.addf %489, %488 : vector<8x64xf32>
    %491 = arith.divf %489, %490 : vector<8x64xf32>
    %492 = vector.extract_strided_slice %485 {offsets = [0, 64], sizes = [8, 64], strides = [1, 1]} : vector<8x256xf32> to vector<8x64xf32>
    %493 = arith.negf %492 : vector<8x64xf32>
    %494 = math.exp %493 : vector<8x64xf32>
    %cst_182 = arith.constant 1.000000e+00 : f32
    %495 = vector.broadcast %cst_182 : f32 to vector<8x64xf32>
    %496 = arith.addf %495, %494 : vector<8x64xf32>
    %497 = arith.divf %495, %496 : vector<8x64xf32>
    %498 = vector.extract_strided_slice %485 {offsets = [0, 128], sizes = [8, 64], strides = [1, 1]} : vector<8x256xf32> to vector<8x64xf32>
    %499 = math.tanh %498 : vector<8x64xf32>
    %500 = vector.extract_strided_slice %485 {offsets = [0, 192], sizes = [8, 64], strides = [1, 1]} : vector<8x256xf32> to vector<8x64xf32>
    %501 = arith.negf %500 : vector<8x64xf32>
    %502 = math.exp %501 : vector<8x64xf32>
    %cst_183 = arith.constant 1.000000e+00 : f32
    %503 = vector.broadcast %cst_183 : f32 to vector<8x64xf32>
    %504 = arith.addf %503, %502 : vector<8x64xf32>
    %505 = arith.divf %503, %504 : vector<8x64xf32>
    %506 = arith.mulf %497, %474 : vector<8x64xf32>
    %507 = arith.mulf %491, %499 : vector<8x64xf32>
    %508 = arith.addf %506, %507 : vector<8x64xf32>
    %509 = math.tanh %508 : vector<8x64xf32>
    %510 = arith.mulf %505, %509 : vector<8x64xf32>
    %511 = vector.extract_strided_slice %510 {offsets = [0, 0], sizes = [8, 32], strides = [1, 1]} : vector<8x64xf32> to vector<8x32xf32>
    %c40_184 = arith.constant 40 : index
    %c0_185 = arith.constant 0 : index
    %512 = vector.load %arg13[%c40_184, %c0_185] : memref<64x64xf32, #tpu.memory_space<vmem>>, vector<8x32xf32>
    tpu.vector_store %arg13[%c40_184, %c0_185], %511 {strides = array<i32>} : memref<64x64xf32, #tpu.memory_space<vmem>>, vector<8x32xf32>,
    %513 = vector.extract_strided_slice %510 {offsets = [0, 32], sizes = [8, 32], strides = [1, 1]} : vector<8x64xf32> to vector<8x32xf32>
    %c16_186 = arith.constant 16 : index
    %c32_187 = arith.constant 32 : index
    %514 = vector.load %arg13[%c16_186, %c32_187] : memref<64x64xf32, #tpu.memory_space<vmem>>, vector<8x32xf32>
    tpu.vector_store %arg13[%c16_186, %c32_187], %513 {strides = array<i32>} : memref<64x64xf32, #tpu.memory_space<vmem>>, vector<8x32xf32>,
    %cst_188 = arith.constant dense<0.000000e+00> : vector<8x256xf32>
    %515 = tpu.matmul %510, %308, %cst_188 {dimension_numbers = #tpu.dot_dimension_numbers<[1], [0], [0], [1], [0, 0, 1, 1], [], []>} : vector<8x64xf32>, vector<64x256xf32>, vector<8x256xf32> -> vector<8x256xf32>
    %c48_189 = arith.constant 48 : index
    %c0_190 = arith.constant 0 : index
    %516 = vector.load %arg12[%c48_189, %c0_190] : memref<64x256xf32, #tpu.memory_space<vmem>>, vector<8x256xf32>
    %c8_191 = arith.constant 8 : index
    %c0_192 = arith.constant 0 : index
    %517 = vector.load %arg12[%c8_191, %c0_192] : memref<64x256xf32, #tpu.memory_space<vmem>>, vector<8x256xf32>
    %518 = arith.select %18, %516, %517 : vector<8x256xi1>, vector<8x256xf32>
    %519 = arith.addf %515, %518 : vector<8x256xf32>
    %520 = vector.extract_strided_slice %519 {offsets = [0, 0], sizes = [8, 64], strides = [1, 1]} : vector<8x256xf32> to vector<8x64xf32>
    %521 = arith.negf %520 : vector<8x64xf32>
    %522 = math.exp %521 : vector<8x64xf32>
    %cst_193 = arith.constant 1.000000e+00 : f32
    %523 = vector.broadcast %cst_193 : f32 to vector<8x64xf32>
    %524 = arith.addf %523, %522 : vector<8x64xf32>
    %525 = arith.divf %523, %524 : vector<8x64xf32>
    %526 = vector.extract_strided_slice %519 {offsets = [0, 64], sizes = [8, 64], strides = [1, 1]} : vector<8x256xf32> to vector<8x64xf32>
    %527 = arith.negf %526 : vector<8x64xf32>
    %528 = math.exp %527 : vector<8x64xf32>
    %cst_194 = arith.constant 1.000000e+00 : f32
    %529 = vector.broadcast %cst_194 : f32 to vector<8x64xf32>
    %530 = arith.addf %529, %528 : vector<8x64xf32>
    %531 = arith.divf %529, %530 : vector<8x64xf32>
    %532 = vector.extract_strided_slice %519 {offsets = [0, 128], sizes = [8, 64], strides = [1, 1]} : vector<8x256xf32> to vector<8x64xf32>
    %533 = math.tanh %532 : vector<8x64xf32>
    %534 = vector.extract_strided_slice %519 {offsets = [0, 192], sizes = [8, 64], strides = [1, 1]} : vector<8x256xf32> to vector<8x64xf32>
    %535 = arith.negf %534 : vector<8x64xf32>
    %536 = math.exp %535 : vector<8x64xf32>
    %cst_195 = arith.constant 1.000000e+00 : f32
    %537 = vector.broadcast %cst_195 : f32 to vector<8x64xf32>
    %538 = arith.addf %537, %536 : vector<8x64xf32>
    %539 = arith.divf %537, %538 : vector<8x64xf32>
    %540 = arith.mulf %531, %508 : vector<8x64xf32>
    %541 = arith.mulf %525, %533 : vector<8x64xf32>
    %542 = arith.addf %540, %541 : vector<8x64xf32>
    %543 = math.tanh %542 : vector<8x64xf32>
    %544 = arith.mulf %539, %543 : vector<8x64xf32>
    %545 = vector.extract_strided_slice %544 {offsets = [0, 0], sizes = [8, 32], strides = [1, 1]} : vector<8x64xf32> to vector<8x32xf32>
    %c48_196 = arith.constant 48 : index
    %c0_197 = arith.constant 0 : index
    %546 = vector.load %arg13[%c48_196, %c0_197] : memref<64x64xf32, #tpu.memory_space<vmem>>, vector<8x32xf32>
    tpu.vector_store %arg13[%c48_196, %c0_197], %545 {strides = array<i32>} : memref<64x64xf32, #tpu.memory_space<vmem>>, vector<8x32xf32>,
    %547 = vector.extract_strided_slice %544 {offsets = [0, 32], sizes = [8, 32], strides = [1, 1]} : vector<8x64xf32> to vector<8x32xf32>
    %c8_198 = arith.constant 8 : index
    %c32_199 = arith.constant 32 : index
    %548 = vector.load %arg13[%c8_198, %c32_199] : memref<64x64xf32, #tpu.memory_space<vmem>>, vector<8x32xf32>
    tpu.vector_store %arg13[%c8_198, %c32_199], %547 {strides = array<i32>} : memref<64x64xf32, #tpu.memory_space<vmem>>, vector<8x32xf32>,
    %cst_200 = arith.constant dense<0.000000e+00> : vector<8x256xf32>
    %549 = tpu.matmul %544, %308, %cst_200 {dimension_numbers = #tpu.dot_dimension_numbers<[1], [0], [0], [1], [0, 0, 1, 1], [], []>} : vector<8x64xf32>, vector<64x256xf32>, vector<8x256xf32> -> vector<8x256xf32>
    %c56_201 = arith.constant 56 : index
    %c0_202 = arith.constant 0 : index
    %550 = vector.load %arg12[%c56_201, %c0_202] : memref<64x256xf32, #tpu.memory_space<vmem>>, vector<8x256xf32>
    %c0_203 = arith.constant 0 : index
    %c0_204 = arith.constant 0 : index
    %551 = vector.load %arg12[%c0_203, %c0_204] : memref<64x256xf32, #tpu.memory_space<vmem>>, vector<8x256xf32>
    %552 = arith.select %18, %550, %551 : vector<8x256xi1>, vector<8x256xf32>
    %553 = arith.addf %549, %552 : vector<8x256xf32>
    %554 = vector.extract_strided_slice %553 {offsets = [0, 0], sizes = [8, 64], strides = [1, 1]} : vector<8x256xf32> to vector<8x64xf32>
    %555 = arith.negf %554 : vector<8x64xf32>
    %556 = math.exp %555 : vector<8x64xf32>
    %cst_205 = arith.constant 1.000000e+00 : f32
    %557 = vector.broadcast %cst_205 : f32 to vector<8x64xf32>
    %558 = arith.addf %557, %556 : vector<8x64xf32>
    %559 = arith.divf %557, %558 : vector<8x64xf32>
    %560 = vector.extract_strided_slice %553 {offsets = [0, 64], sizes = [8, 64], strides = [1, 1]} : vector<8x256xf32> to vector<8x64xf32>
    %561 = arith.negf %560 : vector<8x64xf32>
    %562 = math.exp %561 : vector<8x64xf32>
    %cst_206 = arith.constant 1.000000e+00 : f32
    %563 = vector.broadcast %cst_206 : f32 to vector<8x64xf32>
    %564 = arith.addf %563, %562 : vector<8x64xf32>
    %565 = arith.divf %563, %564 : vector<8x64xf32>
    %566 = vector.extract_strided_slice %553 {offsets = [0, 128], sizes = [8, 64], strides = [1, 1]} : vector<8x256xf32> to vector<8x64xf32>
    %567 = math.tanh %566 : vector<8x64xf32>
    %568 = vector.extract_strided_slice %553 {offsets = [0, 192], sizes = [8, 64], strides = [1, 1]} : vector<8x256xf32> to vector<8x64xf32>
    %569 = arith.negf %568 : vector<8x64xf32>
    %570 = math.exp %569 : vector<8x64xf32>
    %cst_207 = arith.constant 1.000000e+00 : f32
    %571 = vector.broadcast %cst_207 : f32 to vector<8x64xf32>
    %572 = arith.addf %571, %570 : vector<8x64xf32>
    %573 = arith.divf %571, %572 : vector<8x64xf32>
    %574 = arith.mulf %565, %542 : vector<8x64xf32>
    %575 = arith.mulf %559, %567 : vector<8x64xf32>
    %576 = arith.addf %574, %575 : vector<8x64xf32>
    %577 = math.tanh %576 : vector<8x64xf32>
    %578 = arith.mulf %573, %577 : vector<8x64xf32>
    %579 = vector.extract_strided_slice %578 {offsets = [0, 0], sizes = [8, 32], strides = [1, 1]} : vector<8x64xf32> to vector<8x32xf32>
    %c56_208 = arith.constant 56 : index
    %c0_209 = arith.constant 0 : index
    %580 = vector.load %arg13[%c56_208, %c0_209] : memref<64x64xf32, #tpu.memory_space<vmem>>, vector<8x32xf32>
    tpu.vector_store %arg13[%c56_208, %c0_209], %579 {strides = array<i32>} : memref<64x64xf32, #tpu.memory_space<vmem>>, vector<8x32xf32>,
    %581 = vector.extract_strided_slice %578 {offsets = [0, 32], sizes = [8, 32], strides = [1, 1]} : vector<8x64xf32> to vector<8x32xf32>
    %c0_210 = arith.constant 0 : index
    %c32_211 = arith.constant 32 : index
    %582 = vector.load %arg13[%c0_210, %c32_211] : memref<64x64xf32, #tpu.memory_space<vmem>>, vector<8x32xf32>
    tpu.vector_store %arg13[%c0_210, %c32_211], %581 {strides = array<i32>} : memref<64x64xf32, #tpu.memory_space<vmem>>, vector<8x32xf32>,
    %c0_212 = arith.constant 0 : index
    %c0_213 = arith.constant 0 : index
    %583 = vector.load %arg13[%c0_212, %c0_213] : memref<64x64xf32, #tpu.memory_space<vmem>>, vector<64x64xf32>
    %cst_214 = arith.constant 0.000000e+00 : f32
    %584 = vector.broadcast %cst_214 : f32 to vector<64x64xf32>
    %585 = arith.maximumf %583, %584 : vector<64x64xf32>
    %c0_215 = arith.constant 0 : index
    %c0_216 = arith.constant 0 : index
    %586 = vector.load %arg7[%c0_215, %c0_216] : memref<64x32xf32, #tpu.memory_space<vmem>>, vector<64x32xf32>
    %cst_217 = arith.constant dense<0.000000e+00> : vector<64x32xf32>
    %587 = tpu.matmul %585, %586, %cst_217 {dimension_numbers = #tpu.dot_dimension_numbers<[1], [0], [0], [1], [0, 0, 1, 1], [], []>} : vector<64x64xf32>, vector<64x32xf32>, vector<64x32xf32> -> vector<64x32xf32>
    %c0_218 = arith.constant 0 : index
    %c0_219 = arith.constant 0 : index
    %588 = vector.load %arg8[%c0_218, %c0_219] : memref<1x32xf32, #tpu.memory_space<vmem>>, vector<1x32xf32>
    %589 = vector.broadcast %588 : vector<1x32xf32> to vector<64x32xf32>
    %590 = arith.addf %587, %589 : vector<64x32xf32>
    %cst_220 = arith.constant 0.000000e+00 : f32
    %591 = vector.broadcast %cst_220 : f32 to vector<64x32xf32>
    %592 = arith.maximumf %590, %591 : vector<64x32xf32>
    %c0_221 = arith.constant 0 : index
    %c0_222 = arith.constant 0 : index
    %593 = vector.load %arg9[%c0_221, %c0_222] : memref<32x128xf32, #tpu.memory_space<vmem>>, vector<32x128xf32>
    %cst_223 = arith.constant dense<0.000000e+00> : vector<64x128xf32>
    %594 = tpu.matmul %592, %593, %cst_223 {dimension_numbers = #tpu.dot_dimension_numbers<[1], [0], [0], [1], [0, 0, 1, 1], [], []>} : vector<64x32xf32>, vector<32x128xf32>, vector<64x128xf32> -> vector<64x128xf32>
    %c0_224 = arith.constant 0 : index
    %c0_225 = arith.constant 0 : index
    %595 = vector.load %arg10[%c0_224, %c0_225] : memref<1x128xf32, #tpu.memory_space<vmem>>, vector<1x128xf32>
    %596 = vector.broadcast %595 : vector<1x128xf32> to vector<64x128xf32>
    %597 = arith.addf %594, %596 : vector<64x128xf32>
    %598 = arith.negf %597 : vector<64x128xf32>
    %599 = math.exp %598 : vector<64x128xf32>
    %cst_226 = arith.constant 1.000000e+00 : f32
    %600 = vector.broadcast %cst_226 : f32 to vector<64x128xf32>
    %601 = arith.addf %600, %599 : vector<64x128xf32>
    %602 = arith.divf %600, %601 : vector<64x128xf32>
    %c0_227 = arith.constant 0 : index
    %c0_228 = arith.constant 0 : index
    %603 = vector.load %arg11[%c0_227, %c0_228] : memref<64x128xf32, #tpu.memory_space<vmem>>, vector<64x128xf32>
    tpu.vector_store %arg11[%c0_227, %c0_228], %602 {strides = array<i32>} : memref<64x128xf32, #tpu.memory_space<vmem>>, vector<64x128xf32>,
    return
  }
}

</mosaic_0001>

<bundles_post_ra>
// kernel: nsmc_lstm_forward.1
= control target key start
LH: loop header
LB: loop body
LE: loop exit
PB: predicated region body
PF: predicated region fallthrough
CT: control target
= control target key end

     0   :  { %16 = vsyncpa [#allocation5], 0  ;;  %s4296_s0 = inlined_call_operand.vmem [shape: f32[64,32], index: 0, kind: input, shape index: {}]   ;;  %s4297_s1 = inlined_call_operand.hbm [shape: f32[32,256], index: 1, kind: input, shape index: {}]   ;;  %s4298_s2 = inlined_call_operand.vmem [shape: f32[1,256], index: 2, kind: input, shape index: {}]   ;;  %s4299_s3 = inlined_call_operand.vmem [shape: f32[64,256], index: 3, kind: input, shape index: {}]   ;;  %s4300_s4 = inlined_call_operand.vmem [shape: f32[64,256], index: 4, kind: input, shape index: {}]   ;;  %s4301_s5 = inlined_call_operand.hbm [shape: f32[1,256], index: 5, kind: input, shape index: {}]   ;;  %s4302_s6 = inlined_call_operand.hbm [shape: f32[64,256], index: 6, kind: input, shape index: {}]   ;;  %s4303_s7 = inlined_call_operand.vmem [shape: f32[64,32], index: 7, kind: input, shape index: {}]   ;;  %s4304_s8 = inlined_call_operand.vmem [shape: f32[1,32], index: 8, kind: input, shape index: {}]   ;;  %s4305_s9 = inlined_call_operand.vmem [shape: f32[32,128], index: 9, kind: input, shape index: {}]   ;;  %s4306_s10 = inlined_call_operand.vmem [shape: f32[1,128], index: 10, kind: input, shape index: {}]   ;;  %s4307_s11 = inlined_call_operand.vmem [shape: f32[64,128], index: 11, kind: output, shape index: {}]  }
   0x1   :  { %17 = vsyncpa [#allocation7], 0  ;;  %s3361_s17 = smov [#allocation6]   ;;  %s3362_s19 = smov [#allocation4]  }
   0x2   :  { %s44_s18 = sshll.u32 %s3361_s17, 4  ;;  %s25_s20 = sshll.u32 %s3362_s19, 4  ;;  %s45_s18 = int_to_ptr.vmem [resolvable:$true] %s44_s18  ;;  %s3428_s20 = int_to_ptr.vmem [resolvable:$true] %s25_s20 }
   0x3   :  { %s3291_s23 = scalar_lea.hbm %s4301_s5, 32 }
   0x4   :  { %p3292_p0 = scmp.ne.s32.totalorder %s4301_s5, %s3291_s23  ;;  %p3295_p1 = scmp.lt.u32.totalorder %s3291_s23, %s4301_s5 }
   0x6   :  { %p3297_p2 = pnand %p3295_p1, %p3292_p0 }
   0x8   :  { %3300 = shalt.err (!%p3297_p2)
}
   0x9   :  { %s3301_s28 = scalar_lea.vmem %s45_s18, 32  ;;  %p3306_p4 = scmp.lt.s32.totalorder %s45_s18, %s45_s18 }
   0xa   :  { %p3302_p3 = scmp.ne.s32.totalorder %s45_s18, %s3301_s28  ;;  %p3307_p5 = scmp.lt.s32.totalorder %s3301_s28, %s3301_s28 }
   0xc   :  { %p3308_p6 = por %p3307_p5, %p3306_p4 }
   0xe   :  { %p3309_p7 = pnand %p3308_p6, %p3302_p3 }
  0x10   :  { %3312 = shalt.err (!%p3309_p7)
}
  0x11   :  { %47 = dma.hbm_to_vmem [thread:$0]  %s4301_s5, 32, %s45_s18, [#allocation7]  }
  0x12   :  { %s3313_s14 = scalar_lea.hbm %s4297_s1, 1024 }
  0x13   :  { %p3314_p8 = scmp.ne.s32.totalorder %s4297_s1, %s3313_s14  ;;  %p3317_p9 = scmp.lt.u32.totalorder %s3313_s14, %s4297_s1 }
  0x15   :  { %p3319_p10 = pnand %p3317_p9, %p3314_p8 }
  0x17   :  { %3322 = shalt.err (!%p3319_p10)
}
  0x18   :  { %s3323_s21 = scalar_lea.vmem %s3428_s20, 1024  ;;  %p3328_p12 = scmp.lt.s32.totalorder %s3428_s20, %s3428_s20 }
  0x19   :  { %p3324_p11 = scmp.ne.s32.totalorder %s3428_s20, %s3323_s21  ;;  %p3329_p13 = scmp.lt.s32.totalorder %s3323_s21, %s3323_s21 }
  0x1b   :  { %p3330_p0 = por %p3329_p13, %p3328_p12 }
  0x1d   :  { %p3331_p1 = pnand %p3330_p0, %p3324_p11 }
  0x1f   :  { %3334 = shalt.err (!%p3331_p1)
}
  0x20   :  { %s3363_s5 = smov 256   ;;  %s3364_s18 = smov 16  }
  0x21   :  { %31 = dma.hbm_to_vmem [thread:$0]  %s4297_s1, 1024, %s3428_s20, [#allocation5], %s3363_s5, %s3363_s5, %s3364_s18  }
  0x22   :  { %s3365_s24 = smov [#allocation8]   ;;  %s3335_s28 = scalar_lea.hbm %s4302_s6, 2048 }
  0x23   :  { %s53_s25 = sshll.u32 %s3365_s24, 4  ;;  %p3336_p2 = scmp.ne.s32.totalorder %s4302_s6, %s3335_s28  ;;  %s54_s25 = int_to_ptr.vmem [resolvable:$true] %s53_s25 }
  0x24   :  { %p3339_p3 = scmp.lt.u32.totalorder %s3335_s28, %s4302_s6 }
  0x26   :  { %p3341_p4 = pnand %p3339_p3, %p3336_p2 }
  0x28   :  { %3344 = shalt.err (!%p3341_p4)
}
  0x29   :  { %s3345_s14 = scalar_lea.vmem %s54_s25, 2048  ;;  %p3350_p6 = scmp.lt.s32.totalorder %s54_s25, %s54_s25 }
  0x2a   :  { %p3346_p5 = scmp.ne.s32.totalorder %s54_s25, %s3345_s14  ;;  %p3351_p7 = scmp.lt.s32.totalorder %s3345_s14, %s3345_s14 }
  0x2c   :  { %p3352_p8 = por %p3351_p7, %p3350_p6 }
  0x2e   :  { %p3353_p9 = pnand %p3352_p8, %p3346_p5 }
  0x30   :  { %3356 = shalt.err (!%p3353_p9)
}
  0x31   :  { %59 = dma.hbm_to_vmem [thread:$0]  %s4302_s6, 2048, %s54_s25, [#allocation7], %s3363_s5, %s3363_s5, %s3364_s18  }
  0x32   :  { %3357 = dma.done.wait [#allocation5], 1024  }
  0x33   :  { %3358 = vsyncadd [#allocation5], 4294966272 }
  0x34   :  { %3359 = dma.done.wait [#allocation7], 2080  }
  0x35   :  { %3360 = vsyncadd [#allocation7], 4294965216  ;;  %v3366_v0 = vmov 0.0   ;;  %v115_v1 = vld [vmem:[#allocation4 + $0x8] sm:$0xff]  ;;  %v117_v2 = vld [vmem:[#allocation4 + $0x18] sm:$0xff]  ;;  %vm134_vm0 = vcmask 261120   ;;  %v77_v45 = vlaneseq }
  0x36   :  { %223 = vmatprep.mubr.f32.mxu0 %v3366_v0  ;;  %378 = vmatprep.mubr.f32.mxu1 %v3366_v0  ;;  %v114_v3 = vld [vmem:[#allocation4] sm:$0xff]  ;;  %v2756_v4 = vpack.c.bf16 %v117_v2, %v115_v1  ;;  %v116_v5 = vld [vmem:[#allocation4 + $0x10] sm:$0xff]  ;;  %v119_v6 = vld [vmem:[#allocation4 + $0x28] sm:$0xff]  ;;  %vm412_vm3 = vcmask 523520   ;;  %vm310_vm4 = vcmask 523264  }
  0x37   :  { %v121_v7 = vld [vmem:[#allocation4 + $0x38] sm:$0xff]  ;;  %v2758_v8 = vpack.c.bf16 %v116_v5, %v114_v3  ;;  %v118_v10 = vld [vmem:[#allocation4 + $0x20] sm:$0xff]  ;;  %v120_v11 = vld [vmem:[#allocation4 + $0x30] sm:$0xff]  ;;  %v3605_v46 = vshrl.u32 %v77_v45, 7  ;;  %v78_v55 = vand.u32 127, %v77_v45 }
  0x38   :  { %v2760_v9 = vpack.c.bf16 %v121_v7, %v119_v6  ;;  %2757 = vmatprep.subr.bf16.mxu0 %v2756_v4  ;;  %v2762_v12 = vpack.c.bf16 %v120_v11, %v118_v10  ;;  %v289_v13 = vld [vmem:[%s4299_s3 + $0x8] sm:$0xff]  ;;  %v291_v14 = vld [vmem:[%s4299_s3 + $0x18] sm:$0xff]  ;;  %v288_v15 = vld [vmem:[%s4299_s3] sm:$0xff] }
  0x39   :  { %2759 = vmatpush1.bf16.msra.mxu0 %v2758_v8  ;;  %v3482_v16 = vpack.c.bf16 %v291_v14, %v289_v13  ;;  %v290_v17 = vld [vmem:[%s4299_s3 + $0x10] sm:$0xff]  ;;  %v293_v18 = vld [vmem:[%s4299_s3 + $0x28] sm:$0xff]  ;;  %v295_v20 = vld [vmem:[%s4299_s3 + $0x38] sm:$0xff]  ;;  %v126_v47 = vsub.s32 0, %v3605_v46  ;;  %v130_v50 = vsub.s32 1, %v3605_v46  ;;  %v79_v60 = vadd.s32 128, %v78_v55 }
  0x3a   :  { %2761 = vmatprep.subr.bf16.mxu0 %v2760_v9  ;;  %v3490_v19 = vpack.c.bf16 %v290_v17, %v288_v15  ;;  %v292_v21 = vld [vmem:[%s4299_s3 + $0x20] sm:$0xff]  ;;  %v294_v22 = vld [vmem:[%s4299_s3 + $0x30] sm:$0xff]  ;;  %v3502_v23 = vpack.c.bf16 %v295_v20, %v293_v18  ;;  %v297_v24 = vld [vmem:[%s4299_s3 + $0x48] sm:$0xff]  ;;  %v84_v1 = vand.u32 63, %v78_v55 }
  0x3b   :  { %2765 = vmatprep.subr.bf16.mxu1 %v3482_v16  ;;  %v299_v25 = vld [vmem:[%s4299_s3 + $0x58] sm:$0xff]  ;;  %v106_v26 = vld [vmem:[%s4296_s0] sm:$0xff]  ;;  %v3514_v27 = vpack.c.bf16 %v294_v22, %v292_v21  ;;  %v298_v30 = vld [vmem:[%s4299_s3 + $0x50] sm:$0xff]  ;;  %v91_v4 = vand.u32 63, %v79_v60 }
  0x3c   :  { %2767 = vmatpush1.bf16.msra.mxu1 %v3490_v19  ;;  %v3517_v28 = vpack.c.bf16 %v299_v25, %v297_v24  ;;  %v296_v29 = vld [vmem:[%s4299_s3 + $0x40] sm:$0xff]  ;;  %v301_v31 = vld [vmem:[%s4299_s3 + $0x68] sm:$0xff]  ;;  %v303_v32 = vld [vmem:[%s4299_s3 + $0x78] sm:$0xff]  ;;  %vm3628_vm1 = vcmp.lt.s32.totalorder %v84_v1, 32 }
  0x3d   :  { %2763 = vmatpush1.bf16.msra.mxu0 %v2762_v12  ;;  %2769 = vmatprep.subr.bf16.mxu1 %v3502_v23  ;;  %v107_v33 = vld [vmem:[%s4296_s0 + $0x8] sm:$0xff]  ;;  %v3538_v34 = vpack.c.bf16 %v298_v30, %v296_v29  ;;  %v3541_v35 = vpack.c.bf16 %v303_v32, %v301_v31  ;;  %v300_v36 = vld [vmem:[%s4299_s3 + $0x60] sm:$0xff]  ;;  %v302_v37 = vld [vmem:[%s4299_s3 + $0x70] sm:$0xff]  ;;  %vm3632_vm2 = vcmp.lt.s32.totalorder %v91_v4, 32 }
  0x3e   :  { %2797 = vmatprep.subr.bf16.mxu0 %v3482_v16  ;;  %v108_v38 = vld [vmem:[%s4296_s0 + $0x10] sm:$0xff]  ;;  %v3557_v39 = vpack.c.bf16 %v302_v37, %v300_v36  ;;  %v109_v40 = vld [vmem:[%s4296_s0 + $0x18] sm:$0xff]  ;;  %v110_v41 = vld [vmem:[%s4296_s0 + $0x20] sm:$0xff] }
  0x3f   :  { %v111_v42 = vld [vmem:[%s4296_s0 + $0x28] sm:$0xff]  ;;  %v112_v43 = vld [vmem:[%s4296_s0 + $0x30] sm:$0xff]  ;;  %v113_v44 = vld [vmem:[%s4296_s0 + $0x38] sm:$0xff]  ;;  %s3367_s0 = smov 64  }
  0x40   :  { %2592 = vmatmul.mubr.msk.f32.vlgmr.msra.gmra.mrb[0].mxu0 %vm134_vm0, %v106_v26  ;;  %2771 = vmatpush1.bf16.msra.mxu1 %v3514_v27  ;;  %v122_v48 = vld [vmem:[%s4298_s2] sm:$0x3]  ;;  %v2239_v11 = vld [vmem:[%s4303_s7 + $0x8] sm:$0xff] }
  0x41   :  { %229 = vmatprep.mubr.f32.mxu0 %v3366_v0  ;;  %2773 = vmatprep.subr.bf16.mxu1 %v3517_v28  ;;  %v127_v52 = vrot.slane %v122_v48, %v126_v47  ;;  %v131_v53 = vrot.slane %v122_v48, %v130_v50 }
  0x42   :  { %2799 = vmatpush1.bf16.msra.mxu0 %v3490_v19 }
  0x43   :  { %2801 = vmatprep.subr.bf16.mxu0 %v3502_v23 }
  0x44   :  { %2593 = vmatmul.mubr.msk.f32.gmra.mrb[2].mxu0 %vm134_vm0, %v107_v33  ;;  %2775 = vmatpush1.bf16.msra.mxu1 %v3538_v34 }
  0x45   :  { %235 = vmatprep.mubr.f32.mxu0 %v3366_v0  ;;  %2777 = vmatprep.subr.bf16.mxu1 %v3541_v35 }
  0x46   :  { %2803 = vmatpush1.bf16.msra.mxu0 %v3514_v27 }
  0x47   :  { %2805 = vmatprep.subr.bf16.mxu0 %v3517_v28 }
  0x48   :  { %2594 = vmatmul.mubr.msk.f32.gmra.mrb[4].mxu0 %vm134_vm0, %v108_v38  ;;  %2779 = vmatpush1.bf16.msra.mxu1 %v3557_v39 }
  0x49   :  { %241 = vmatprep.mubr.f32.mxu0 %v3366_v0  ;;  %2781 = vmatprep.subr.bf16.mxu1 %v3482_v16 }
  0x4a   :  { %2807 = vmatpush1.bf16.msra.mxu0 %v3538_v34 }
  0x4b   :  { %2809 = vmatprep.subr.bf16.mxu0 %v3541_v35  ;;  %379 = vmatmul.mubr.f32.vlgmr.msra.gmra.mrb[0].mxu1 %v3366_v0 }
  0x4c   :  { %2595 = vmatmul.mubr.msk.f32.gmra.mrb[6].mxu0 %vm134_vm0, %v109_v40  ;;  %2783 = vmatpush1.bf16.msra.mxu1 %v3490_v19 }
  0x4d   :  { %247 = vmatprep.mubr.f32.mxu0 %v3366_v0  ;;  %2785 = vmatprep.subr.bf16.mxu1 %v3502_v23 }
  0x4e   :  { %486 = vmatprep.mubr.f32.mxu1 %v3366_v0  ;;  %2811 = vmatpush1.bf16.msra.mxu0 %v3557_v39 }
  0x4f   :  { %2829 = vmatprep.subr.bf16.mxu0 %v3482_v16 }
  0x50   :  { %2596 = vmatmul.mubr.msk.f32.gmra.mrb[8].mxu0 %vm134_vm0, %v110_v41  ;;  %2787 = vmatpush1.bf16.msra.mxu1 %v3514_v27 }
  0x51   :  { %253 = vmatprep.mubr.f32.mxu0 %v3366_v0  ;;  %2789 = vmatprep.subr.bf16.mxu1 %v3517_v28 }
  0x54   :  { %2597 = vmatmul.mubr.msk.f32.gmra.mrb[10].mxu0 %vm134_vm0, %v111_v42  ;;  %2791 = vmatpush1.bf16.msra.mxu1 %v3538_v34 }
  0x55   :  { %259 = vmatprep.mubr.f32.mxu0 %v3366_v0  ;;  %2793 = vmatprep.subr.bf16.mxu1 %v3541_v35 }
  0x58   :  { %2598 = vmatmul.mubr.msk.f32.gmra.mrb[12].mxu0 %vm134_vm0, %v112_v43  ;;  %2795 = vmatpush1.bf16.msra.mxu1 %v3557_v39 }
  0x59   :  { %265 = vmatprep.mubr.f32.mxu0 %v3366_v0  ;;  %2813 = vmatprep.subr.bf16.mxu1 %v3482_v16 }
  0x5c   :  { %2599 = vmatmul.mubr.msk.f32.gmra.mrb[14].mxu0 %vm134_vm0, %v113_v44 }
  0x5d   :  { %593 = vmatprep.mubr.f32.mxu0 %v3366_v0 }
 0x113   :  { %v225_v49 = vpop.f32.mrb[0].mxu0 }
 0x114   :  { %v227_v51 = vpop.f32.mrb[1].mxu0  ;;  %v3696_v44 = vadd.f32 %v225_v49, %v127_v52 }
 0x117   :  { %v231_v54 = vpop.f32.mrb[2].mxu0 }
 0x118   :  { %v3616_v56 = vadd.f32 %v231_v54, %v127_v52  ;;  %v233_v57 = vpop.f32.mrb[3].mxu0  ;;  %v3700_v54 = vadd.f32 %v227_v51, %v131_v53 }
 0x119   :  { %v3618_v58 = vadd.f32 %v233_v57, %v131_v53 }
 0x11b   :  { %v237_v59 = vpop.f32.mrb[4].mxu0 }
 0x11c   :  { %v3620_v61 = vadd.f32 %v237_v59, %v127_v52  ;;  %v239_v62 = vpop.f32.mrb[5].mxu0 }
 0x11d   :  { %v3622_v63 = vadd.f32 %v239_v62, %v131_v53 }
 0x11e   :  { %v380_v3 = vpop.f32.mrb[0].mxu1 }
 0x11f   :  { %v243_v2 = vpop.f32.mrb[6].mxu0  ;;  %v382_v7 = vpop.f32.mrb[1].mxu1 }
 0x120   :  { %v3624_v5 = vadd.f32 %v243_v2, %v127_v52  ;;  %v245_v6 = vpop.f32.mrb[7].mxu0 }
 0x121   :  { %v3626_v8 = vadd.f32 %v245_v6, %v131_v53 }
 0x123   :  { %v249_v10 = vpop.f32.mrb[8].mxu0 }
 0x124   :  { %v3636_v12 = vadd.f32 %v249_v10, %v127_v52  ;;  %v251_v13 = vpop.f32.mrb[9].mxu0 }
 0x125   :  { %v3638_v14 = vadd.f32 %v251_v13, %v131_v53 }
 0x126   :  { %v632_v15 = vsel %vm3628_vm1, %v3624_v5, %v3636_v12  ;;  %v739_v17 = vsel %vm3628_vm1, %v3636_v12, %v3624_v5 }
 0x127   :  { %v255_v18 = vpop.f32.mrb[10].mxu0  ;;  %v633_v20 = vsel %vm3632_vm2, %v3626_v8, %v3638_v14  ;;  %v740_v21 = vsel %vm3632_vm2, %v3638_v14, %v3626_v8 }
 0x128   :  { %v3656_v22 = vadd.f32 %v255_v18, %v127_v52  ;;  %v257_v24 = vpop.f32.mrb[11].mxu0 }
 0x129   :  { %v3658_v25 = vadd.f32 %v257_v24, %v131_v53 }
 0x12a   :  { %v525_v26 = vsel %vm3628_vm1, %v3620_v61, %v3656_v22  ;;  %v846_v29 = vsel %vm3628_vm1, %v3656_v22, %v3620_v61 }
 0x12b   :  { %v261_v30 = vpop.f32.mrb[12].mxu0  ;;  %v526_v31 = vsel %vm3632_vm2, %v3622_v63, %v3658_v25  ;;  %v847_v32 = vsel %vm3632_vm2, %v3658_v25, %v3622_v63 }
 0x12c   :  { %v3676_v33 = vadd.f32 %v261_v30, %v127_v52  ;;  %v263_v36 = vpop.f32.mrb[13].mxu0 }
 0x12d   :  { %v3678_v37 = vadd.f32 %v263_v36, %v131_v53 }
 0x12e   :  { %v418_v38 = vsel %vm3628_vm1, %v3616_v56, %v3676_v33  ;;  %v953_v40 = vsel %vm3628_vm1, %v3676_v33, %v3616_v56 }
 0x12f   :  { %v267_v41 = vpop.f32.mrb[14].mxu0  ;;  %v419_v42 = vsel %vm3632_vm2, %v3618_v58, %v3678_v37  ;;  %v954_v43 = vsel %vm3632_vm2, %v3678_v37, %v3618_v58 }
 0x130   :  { %v3698_v45 = vadd.f32 %v267_v41, %v127_v52  ;;  %v269_v48 = vpop.f32.mrb[15].mxu0 }
 0x131   :  { %v3702_v55 = vadd.f32 %v269_v48, %v131_v53 }
 0x132   :  { %v308_v57 = vsel %vm3628_vm1, %v3696_v44, %v3698_v45  ;;  %v1060_v59 = vsel %vm3628_vm1, %v3698_v45, %v3696_v44  ;;  %v1172_v44 = vld [vmem:[%s4300_s4 + $0x8] sm:$0xff]  ;;  %v1174_v45 = vld [vmem:[%s4300_s4 + $0x18] sm:$0xff] }
 0x133   :  { %v381_v60 = vadd.f32 %v380_v3, %v308_v57  ;;  %v309_v49 = vsel %vm3632_vm2, %v3700_v54, %v3702_v55  ;;  %v1061_v51 = vsel %vm3632_vm2, %v3702_v55, %v3700_v54  ;;  %v1171_v54 = vld [vmem:[%s4300_s4] sm:$0xff]  ;;  %v2892_v55 = vpack.c.bf16 %v1174_v45, %v1172_v44 }
 0x134   :  { %v383_v52 = vadd.f32 %v382_v7, %v309_v49 }
 0x135   :  { %v2600_v53 = vmul.f32 -1.442695, %v381_v60 }
 0x136   :  { %v2601_v6 = vmul.f32 -1.442695, %v383_v52 }
 0x137   :  { %3067 = vpow2.f32 %v2600_v53 }
 0x138   :  { %3069 = vtanh.f32 %v383_v52 }
 0x141   :  { %v3068_v62 = vpop.eup %3067 }
 0x142   :  { %v388_v1 = vadd.f32 1.0, %v3068_v62  ;;  %v3070_v2 = vpop.eup %3069 }
 0x144   :  { %3071 = vrcp.f32 %v388_v1 }
 0x145   :  { %3073 = vpow2.f32 %v2601_v6 }
 0x14e   :  { %v3072_v4 = vpop.eup %3071 }
 0x14f   :  { %v399_v3 = vmul.f32 %v3072_v4, %v3070_v2  ;;  %v3074_v10 = vpop.eup %3073  ;;  %v398_v18 = vmul.f32 0.0, %v3072_v4 }
 0x150   :  { %v395_v13 = vadd.f32 1.0, %v3074_v10 }
 0x151   :  { %401 = vrot.lane.b32.xlu0 %v399_v3, %s3367_s0 }
 0x152   :  { %3075 = vrcp.f32 %v395_v13 }
 0x15c   :  { %v3076_v7 = vpop.eup %3075 }
 0x1c3   :  { %v402_v24 = vpop.permute.xlu0 %401 }
 0x1c4   :  { %v404_v30 = vadd.f32 %v402_v24, %v398_v18 }
 0x1c6   :  { %3077 = vtanh.f32 %v404_v30 }
 0x1d0   :  { %v3078_v36 = vpop.eup %3077 }
 0x1d1   :  { %v406_v41 = vmul.f32 %v3078_v36, %v3076_v7 }
 0x1d3   :  { %408 = vrot.lane.b32.xlu0 %v406_v41, %s3367_s0 }
 0x245   :  { %v409_v48 = vpop.permute.xlu0 %408 }
 0x246   :  { %411 = vst.msk [vmem:[#allocation3] sm:$0xff] %vm134_vm0, %v409_v48  ;;  %2602 = vmatmul.mubr.msk.f32.vlgmr.msra.gmra.mrb[2].mxu1 %vm310_vm4, %v409_v48 }
 0x247   :  { %413 = vst.msk [vmem:[#allocation3 + $0x38] sm:$0xff] %vm412_vm3, %v409_v48  ;;  %2815 = vmatpush1.bf16.msra.mxu1 %v3490_v19  ;;  %700 = vmatprep.mubr.f32.mxu1 %v3366_v0 }
 0x248   :  { %2817 = vmatprep.subr.bf16.mxu1 %v3502_v23 }
 0x24b   :  { %2819 = vmatpush1.bf16.msra.mxu1 %v3514_v27 }
 0x24c   :  { %2821 = vmatprep.subr.bf16.mxu1 %v3517_v28 }
 0x24f   :  { %2823 = vmatpush1.bf16.msra.mxu1 %v3538_v34 }
 0x250   :  { %2825 = vmatprep.subr.bf16.mxu1 %v3541_v35 }
 0x253   :  { %2827 = vmatpush1.bf16.msra.mxu1 %v3557_v39 }
 0x254   :  { %2845 = vmatprep.subr.bf16.mxu1 %v3482_v16 }
 0x319   :  { %v488_v57 = vpop.f32.mrb[2].mxu1 }
 0x31a   :  { %v489_v60 = vadd.f32 %v488_v57, %v418_v38  ;;  %v490_v49 = vpop.f32.mrb[3].mxu1 }
 0x31b   :  { %v491_v52 = vadd.f32 %v490_v49, %v419_v42 }
 0x31c   :  { %v2603_v53 = vmul.f32 -1.442695, %v489_v60 }
 0x31d   :  { %v2604_v6 = vmul.f32 -1.442695, %v491_v52 }
 0x31e   :  { %3079 = vpow2.f32 %v2603_v53 }
 0x31f   :  { %3081 = vtanh.f32 %v491_v52 }
 0x328   :  { %v3080_v62 = vpop.eup %3079 }
 0x329   :  { %v496_v1 = vadd.f32 1.0, %v3080_v62  ;;  %v3082_v2 = vpop.eup %3081 }
 0x32b   :  { %3083 = vrcp.f32 %v496_v1 }
 0x32c   :  { %3085 = vpow2.f32 %v2604_v6 }
 0x335   :  { %v3084_v4 = vpop.eup %3083 }
 0x336   :  { %v507_v3 = vmul.f32 %v3084_v4, %v3082_v2  ;;  %v3086_v10 = vpop.eup %3085  ;;  %v506_v18 = vmul.f32 %v3084_v4, %v404_v30 }
 0x337   :  { %v503_v13 = vadd.f32 1.0, %v3086_v10 }
 0x338   :  { %509 = vrot.lane.b32.xlu1 %v507_v3, %s3367_s0 }
 0x339   :  { %3087 = vrcp.f32 %v503_v13 }
 0x343   :  { %v3088_v42 = vpop.eup %3087 }
 0x3aa   :  { %v510_v24 = vpop.permute.xlu1 %509 }
 0x3ab   :  { %v512_v38 = vadd.f32 %v510_v24, %v506_v18 }
 0x3ad   :  { %3089 = vtanh.f32 %v512_v38 }
 0x3b7   :  { %v3090_v7 = vpop.eup %3089 }
 0x3b8   :  { %v514_v36 = vmul.f32 %v3090_v7, %v3088_v42 }
 0x3ba   :  { %516 = vrot.lane.b32.xlu1 %v514_v36, %s3367_s0 }
 0x42c   :  { %v517_v41 = vpop.permute.xlu1 %516 }
 0x42d   :  { %519 = vst.msk [vmem:[#allocation3 + $0x8] sm:$0xff] %vm134_vm0, %v517_v41  ;;  %2605 = vmatmul.mubr.msk.f32.vlgmr.msra.gmra.mrb[16].mxu0 %vm310_vm4, %v517_v41 }
 0x42e   :  { %520 = vst.msk [vmem:[#allocation3 + $0x30] sm:$0xff] %vm412_vm3, %v517_v41  ;;  %2831 = vmatpush1.bf16.msra.mxu0 %v3490_v19  ;;  %807 = vmatprep.mubr.f32.mxu0 %v3366_v0 }
 0x42f   :  { %2833 = vmatprep.subr.bf16.mxu0 %v3502_v23 }
 0x432   :  { %2835 = vmatpush1.bf16.msra.mxu0 %v3514_v27 }
 0x433   :  { %2837 = vmatprep.subr.bf16.mxu0 %v3517_v28 }
 0x436   :  { %2839 = vmatpush1.bf16.msra.mxu0 %v3538_v34 }
 0x437   :  { %2841 = vmatprep.subr.bf16.mxu0 %v3541_v35 }
 0x43a   :  { %2843 = vmatpush1.bf16.msra.mxu0 %v3557_v39 }
 0x43b   :  { %2861 = vmatprep.subr.bf16.mxu0 %v3482_v16 }
 0x500   :  { %v595_v30 = vpop.f32.mrb[16].mxu0 }
 0x501   :  { %v596_v48 = vadd.f32 %v595_v30, %v525_v26  ;;  %v597_v57 = vpop.f32.mrb[17].mxu0 }
 0x502   :  { %v598_v60 = vadd.f32 %v597_v57, %v526_v31 }
 0x503   :  { %v2606_v49 = vmul.f32 -1.442695, %v596_v48 }
 0x504   :  { %v2607_v4 = vmul.f32 -1.442695, %v598_v60 }
 0x505   :  { %3091 = vpow2.f32 %v2606_v49 }
 0x506   :  { %3093 = vtanh.f32 %v598_v60 }
 0x50f   :  { %v3092_v52 = vpop.eup %3091 }
 0x510   :  { %v603_v53 = vadd.f32 1.0, %v3092_v52  ;;  %v3094_v62 = vpop.eup %3093 }
 0x512   :  { %3095 = vrcp.f32 %v603_v53 }
 0x513   :  { %3097 = vpow2.f32 %v2607_v4 }
 0x51c   :  { %v3096_v1 = vpop.eup %3095 }
 0x51d   :  { %v614_v2 = vmul.f32 %v3096_v1, %v3094_v62  ;;  %v3098_v26 = vpop.eup %3097  ;;  %v613_v6 = vmul.f32 %v3096_v1, %v512_v38 }
 0x51e   :  { %v610_v3 = vadd.f32 1.0, %v3098_v26 }
 0x51f   :  { %616 = vrot.lane.b32.xlu0 %v614_v2, %s3367_s0 }
 0x520   :  { %3099 = vrcp.f32 %v610_v3 }
 0x52a   :  { %v3100_v31 = vpop.eup %3099 }
 0x591   :  { %v617_v10 = vpop.permute.xlu0 %616 }
 0x592   :  { %v619_v13 = vadd.f32 %v617_v10, %v613_v6 }
 0x594   :  { %3101 = vtanh.f32 %v619_v13 }
 0x59e   :  { %v3102_v18 = vpop.eup %3101 }
 0x59f   :  { %v621_v24 = vmul.f32 %v3102_v18, %v3100_v31 }
 0x5a1   :  { %623 = vrot.lane.b32.xlu1 %v621_v24, %s3367_s0 }
 0x613   :  { %v624_v42 = vpop.permute.xlu1 %623 }
 0x614   :  { %626 = vst.msk [vmem:[#allocation3 + $0x10] sm:$0xff] %vm134_vm0, %v624_v42  ;;  %2608 = vmatmul.mubr.msk.f32.vlgmr.msra.gmra.mrb[4].mxu1 %vm310_vm4, %v624_v42 }
 0x615   :  { %627 = vst.msk [vmem:[#allocation3 + $0x28] sm:$0xff] %vm412_vm3, %v624_v42  ;;  %2847 = vmatpush1.bf16.msra.mxu1 %v3490_v19  ;;  %914 = vmatprep.mubr.f32.mxu1 %v3366_v0 }
 0x616   :  { %2849 = vmatprep.subr.bf16.mxu1 %v3502_v23 }
 0x619   :  { %2851 = vmatpush1.bf16.msra.mxu1 %v3514_v27 }
 0x61a   :  { %2853 = vmatprep.subr.bf16.mxu1 %v3517_v28 }
 0x61d   :  { %2855 = vmatpush1.bf16.msra.mxu1 %v3538_v34 }
 0x61e   :  { %2857 = vmatprep.subr.bf16.mxu1 %v3541_v35 }
 0x621   :  { %2859 = vmatpush1.bf16.msra.mxu1 %v3557_v39 }
 0x622   :  { %2877 = vmatprep.subr.bf16.mxu1 %v3482_v16 }
 0x6e7   :  { %v702_v38 = vpop.f32.mrb[4].mxu1 }
 0x6e8   :  { %v703_v7 = vadd.f32 %v702_v38, %v632_v15  ;;  %v704_v36 = vpop.f32.mrb[5].mxu1 }
 0x6e9   :  { %v705_v41 = vadd.f32 %v704_v36, %v633_v20 }
 0x6ea   :  { %v2609_v30 = vmul.f32 -1.442695, %v703_v7 }
 0x6eb   :  { %v2610_v52 = vmul.f32 -1.442695, %v705_v41 }
 0x6ec   :  { %3103 = vpow2.f32 %v2609_v30 }
 0x6ed   :  { %3105 = vtanh.f32 %v705_v41 }
 0x6f6   :  { %v3104_v48 = vpop.eup %3103 }
 0x6f7   :  { %v710_v57 = vadd.f32 1.0, %v3104_v48  ;;  %v3106_v16 = vpop.eup %3105 }
 0x6f9   :  { %3107 = vrcp.f32 %v710_v57 }
 0x6fa   :  { %3109 = vpow2.f32 %v2610_v52 }
 0x703   :  { %v3108_v60 = vpop.eup %3107 }
 0x704   :  { %v721_v49 = vmul.f32 %v3108_v60, %v3106_v16  ;;  %v3110_v15 = vpop.eup %3109  ;;  %v720_v62 = vmul.f32 %v3108_v60, %v619_v13 }
 0x705   :  { %v717_v53 = vadd.f32 1.0, %v3110_v15 }
 0x706   :  { %723 = vrot.lane.b32.xlu0 %v721_v49, %s3367_s0 }
 0x707   :  { %3111 = vrcp.f32 %v717_v53 }
 0x711   :  { %v3112_v20 = vpop.eup %3111 }
 0x778   :  { %v724_v1 = vpop.permute.xlu0 %723 }
 0x779   :  { %v726_v2 = vadd.f32 %v724_v1, %v720_v62 }
 0x77b   :  { %3113 = vtanh.f32 %v726_v2 }
 0x785   :  { %v3114_v4 = vpop.eup %3113 }
 0x786   :  { %v728_v26 = vmul.f32 %v3114_v4, %v3112_v20 }
 0x788   :  { %730 = vrot.lane.b32.xlu1 %v728_v26, %s3367_s0 }
 0x7fa   :  { %v731_v3 = vpop.permute.xlu1 %730 }
 0x7fb   :  { %733 = vst.msk [vmem:[#allocation3 + $0x18] sm:$0xff] %vm134_vm0, %v731_v3  ;;  %2611 = vmatmul.mubr.msk.f32.vlgmr.msra.gmra.mrb[18].mxu0 %vm310_vm4, %v731_v3 }
 0x7fc   :  { %734 = vst.msk [vmem:[#allocation3 + $0x20] sm:$0xff] %vm412_vm3, %v731_v3  ;;  %2863 = vmatpush1.bf16.msra.mxu0 %v3490_v19  ;;  %1021 = vmatprep.mubr.f32.mxu0 %v3366_v0 }
 0x7fd   :  { %2865 = vmatprep.subr.bf16.mxu0 %v3502_v23 }
 0x800   :  { %2867 = vmatpush1.bf16.msra.mxu0 %v3514_v27 }
 0x801   :  { %2869 = vmatprep.subr.bf16.mxu0 %v3517_v28 }
 0x804   :  { %2871 = vmatpush1.bf16.msra.mxu0 %v3538_v34 }
 0x805   :  { %2873 = vmatprep.subr.bf16.mxu0 %v3541_v35 }
 0x808   :  { %2875 = vmatpush1.bf16.msra.mxu0 %v3557_v39 }
 0x809   :  { %2893 = vmatprep.subr.bf16.mxu0 %v2892_v55 }
 0x8ce   :  { %v809_v6 = vpop.f32.mrb[18].mxu0 }
 0x8cf   :  { %v810_v10 = vadd.f32 %v809_v6, %v739_v17  ;;  %v811_v13 = vpop.f32.mrb[19].mxu0 }
 0x8d0   :  { %v812_v31 = vadd.f32 %v811_v13, %v740_v21 }
 0x8d1   :  { %v2612_v18 = vmul.f32 -1.442695, %v810_v10 }
 0x8d2   :  { %v2613_v5 = vmul.f32 -1.442695, %v812_v31 }
 0x8d3   :  { %3115 = vpow2.f32 %v2612_v18 }
 0x8d4   :  { %3117 = vtanh.f32 %v812_v31 }
 0x8dd   :  { %v3116_v24 = vpop.eup %3115 }
 0x8de   :  { %v817_v42 = vadd.f32 1.0, %v3116_v24  ;;  %v3118_v38 = vpop.eup %3117 }
 0x8e0   :  { %3119 = vrcp.f32 %v817_v42 }
 0x8e1   :  { %3121 = vpow2.f32 %v2613_v5 }
 0x8ea   :  { %v3120_v7 = vpop.eup %3119 }
 0x8eb   :  { %v828_v36 = vmul.f32 %v3120_v7, %v3118_v38  ;;  %v3122_v12 = vpop.eup %3121  ;;  %v827_v41 = vmul.f32 %v3120_v7, %v726_v2 }
 0x8ec   :  { %v824_v17 = vadd.f32 1.0, %v3122_v12 }
 0x8ed   :  { %830 = vrot.lane.b32.xlu0 %v828_v36, %s3367_s0 }
 0x8ee   :  { %3123 = vrcp.f32 %v824_v17 }
 0x8f8   :  { %v3124_v8 = vpop.eup %3123 }
 0x95f   :  { %v831_v30 = vpop.permute.xlu0 %830 }
 0x960   :  { %v833_v48 = vadd.f32 %v831_v30, %v827_v41 }
 0x962   :  { %3125 = vtanh.f32 %v833_v48 }
 0x96c   :  { %v3126_v14 = vpop.eup %3125 }
 0x96d   :  { %v835_v21 = vmul.f32 %v3126_v14, %v3124_v8 }
 0x96f   :  { %837 = vrot.lane.b32.xlu1 %v835_v21, %s3367_s0  ;;  %v1178_v21 = vld [vmem:[%s4300_s4 + $0x38] sm:$0xff] }
 0x9e1   :  { %v838_v57 = vpop.permute.xlu1 %837 }
 0x9e2   :  { %840 = vst.msk [vmem:[#allocation3 + $0x20] sm:$0xff] %vm134_vm0, %v838_v57  ;;  %2614 = vmatmul.mubr.msk.f32.vlgmr.msra.gmra.mrb[6].mxu1 %vm310_vm4, %v838_v57 }
 0x9e3   :  { %841 = vst.msk [vmem:[#allocation3 + $0x18] sm:$0xff] %vm412_vm3, %v838_v57  ;;  %2879 = vmatpush1.bf16.msra.mxu1 %v3490_v19  ;;  %1128 = vmatprep.mubr.f32.mxu1 %v3366_v0 }
 0x9e4   :  { %2881 = vmatprep.subr.bf16.mxu1 %v3502_v23 }
 0x9e7   :  { %2883 = vmatpush1.bf16.msra.mxu1 %v3514_v27 }
 0x9e8   :  { %2885 = vmatprep.subr.bf16.mxu1 %v3517_v28 }
 0x9ea   :  { %v1166_v55 = vld [vmem:[#allocation3 + $0x18] sm:$0xff] }
 0x9eb   :  { %2887 = vmatpush1.bf16.msra.mxu1 %v3538_v34 }
 0x9ec   :  { %2889 = vmatprep.subr.bf16.mxu1 %v3541_v35 }
 0x9ef   :  { %2891 = vmatpush1.bf16.msra.mxu1 %v3557_v39 }
 0xab5   :  { %v916_v16 = vpop.f32.mrb[6].mxu1 }
 0xab6   :  { %v917_v19 = vadd.f32 %v916_v16, %v846_v29  ;;  %v918_v60 = vpop.f32.mrb[7].mxu1 }
 0xab7   :  { %v919_v23 = vadd.f32 %v918_v60, %v847_v32  ;;  %v1177_v60 = vld [vmem:[%s4300_s4 + $0x30] sm:$0xff] }
 0xab8   :  { %v2615_v27 = vmul.f32 -1.442695, %v917_v19  ;;  %v1175_v19 = vld [vmem:[%s4300_s4 + $0x20] sm:$0xff] }
 0xab9   :  { %v2616_v61 = vmul.f32 -1.442695, %v919_v23 }
 0xaba   :  { %3127 = vpow2.f32 %v2615_v27 }
 0xabb   :  { %3129 = vtanh.f32 %v919_v23  ;;  %v2898_v23 = vpack.c.bf16 %v1177_v60, %v1175_v19  ;;  %v1187_v60 = vld [vmem:[#allocation6] sm:$0x3] }
 0xac4   :  { %v3128_v28 = vpop.eup %3127 }
 0xac5   :  { %v924_v34 = vadd.f32 1.0, %v3128_v28  ;;  %v3130_v35 = vpop.eup %3129 }
 0xac7   :  { %3131 = vrcp.f32 %v924_v34 }
 0xac8   :  { %3133 = vpow2.f32 %v2616_v61  ;;  %v1182_v61 = vld [vmem:[%s4300_s4 + $0x58] sm:$0xff] }
 0xad1   :  { %v3132_v39 = vpop.eup %3131 }
 0xad2   :  { %v935_v49 = vmul.f32 %v3132_v39, %v3130_v35  ;;  %v3134_v22 = vpop.eup %3133  ;;  %v934_v52 = vmul.f32 %v3132_v39, %v833_v48 }
 0xad3   :  { %v931_v29 = vadd.f32 1.0, %v3134_v22 }
 0xad4   :  { %937 = vrot.lane.b32.xlu0 %v935_v49, %s3367_s0  ;;  %v1180_v49 = vld [vmem:[%s4300_s4 + $0x48] sm:$0xff] }
 0xad5   :  { %3135 = vrcp.f32 %v931_v29  ;;  %v2900_v29 = vpack.c.bf16 %v1182_v61, %v1180_v49 }
 0xadf   :  { %v3136_v63 = vpop.eup %3135 }
 0xb46   :  { %v938_v15 = vpop.permute.xlu0 %937 }
 0xb47   :  { %v940_v53 = vadd.f32 %v938_v15, %v934_v52  ;;  %v1179_v52 = vld [vmem:[%s4300_s4 + $0x40] sm:$0xff]  ;;  %v1181_v15 = vld [vmem:[%s4300_s4 + $0x50] sm:$0xff] }
 0xb49   :  { %3137 = vtanh.f32 %v940_v53 }
 0xb53   :  { %v3138_v25 = vpop.eup %3137 }
 0xb54   :  { %v942_v32 = vmul.f32 %v3138_v25, %v3136_v63  ;;  %v1184_v63 = vld [vmem:[%s4300_s4 + $0x68] sm:$0xff]  ;;  %v1186_v25 = vld [vmem:[%s4300_s4 + $0x78] sm:$0xff] }
 0xb56   :  { %944 = vrot.lane.b32.xlu1 %v942_v32, %s3367_s0  ;;  %v1183_v32 = vld [vmem:[%s4300_s4 + $0x60] sm:$0xff] }
 0xbc8   :  { %v945_v62 = vpop.permute.xlu1 %944 }
 0xbc9   :  { %947 = vst.msk [vmem:[#allocation3 + $0x28] sm:$0xff] %vm134_vm0, %v945_v62  ;;  %2617 = vmatmul.mubr.msk.f32.vlgmr.msra.gmra.mrb[20].mxu0 %vm310_vm4, %v945_v62 }
 0xbca   :  { %948 = vst.msk [vmem:[#allocation3 + $0x10] sm:$0xff] %vm412_vm3, %v945_v62  ;;  %1287 = vmatprep.mubr.f32.mxu0 %v3366_v0  ;;  %v2904_v62 = vpack.c.bf16 %v1186_v25, %v1184_v63 }
 0xc9c   :  { %v1023_v1 = vpop.f32.mrb[20].mxu0 }
 0xc9d   :  { %v1024_v2 = vadd.f32 %v1023_v1, %v953_v40  ;;  %v1025_v20 = vpop.f32.mrb[21].mxu0  ;;  %v1185_v1 = vld [vmem:[%s4300_s4 + $0x70] sm:$0xff] }
 0xc9e   :  { %v1026_v4 = vadd.f32 %v1025_v20, %v954_v43 }
 0xc9f   :  { %v2618_v26 = vmul.f32 -1.442695, %v1024_v2  ;;  %v2906_v2 = vpack.c.bf16 %v1185_v1, %v1183_v32 }
 0xca0   :  { %v2619_v56 = vmul.f32 -1.442695, %v1026_v4 }
 0xca1   :  { %3139 = vpow2.f32 %v2618_v26 }
 0xca2   :  { %3141 = vtanh.f32 %v1026_v4 }
 0xcab   :  { %v3140_v3 = vpop.eup %3139 }
 0xcac   :  { %v1031_v6 = vadd.f32 1.0, %v3140_v3  ;;  %v3142_v10 = vpop.eup %3141  ;;  %v1353_v3 = vld [vmem:[#allocation8 + $0x8] sm:$0xff] }
 0xcae   :  { %3143 = vrcp.f32 %v1031_v6  ;;  %v1355_v6 = vld [vmem:[#allocation8 + $0x18] sm:$0xff] }
 0xcaf   :  { %3145 = vpow2.f32 %v2619_v56 }
 0xcb8   :  { %v3144_v13 = vpop.eup %3143 }
 0xcb9   :  { %v1042_v31 = vmul.f32 %v3144_v13, %v3142_v10  ;;  %v3146_v33 = vpop.eup %3145  ;;  %v1041_v18 = vmul.f32 %v3144_v13, %v940_v53  ;;  %v2902_v53 = vpack.c.bf16 %v1181_v15, %v1179_v52  ;;  %v3910_v10 = vpack.c.bf16 %v1355_v6, %v1353_v3  ;;  %v1352_v13 = vld [vmem:[#allocation8] sm:$0xff] }
 0xcba   :  { %v1038_v40 = vadd.f32 1.0, %v3146_v33  ;;  %v1357_v33 = vld [vmem:[#allocation8 + $0x28] sm:$0xff] }
 0xcbb   :  { %1044 = vrot.lane.b32.xlu0 %v1042_v31, %s3367_s0  ;;  %v1354_v31 = vld [vmem:[#allocation8 + $0x10] sm:$0xff]  ;;  %2909 = vmatprep.subr.bf16.mxu1 %v3910_v10 }
 0xcbc   :  { %3147 = vrcp.f32 %v1038_v40  ;;  %v3912_v56 = vpack.c.bf16 %v1354_v31, %v1352_v13  ;;  %v1359_v40 = vld [vmem:[#allocation8 + $0x38] sm:$0xff] }
 0xcc6   :  { %v3148_v58 = vpop.eup %3147 }
 0xd2d   :  { %v1045_v24 = vpop.permute.xlu0 %1044 }
 0xd2e   :  { %v1047_v42 = vadd.f32 %v1045_v24, %v1041_v18  ;;  %v3917_v18 = vpack.c.bf16 %v1359_v40, %v1357_v33  ;;  %v1356_v24 = vld [vmem:[#allocation8 + $0x20] sm:$0xff] }
 0xd30   :  { %3149 = vtanh.f32 %v1047_v42 }
 0xd3a   :  { %v3150_v37 = vpop.eup %3149 }
 0xd3b   :  { %v1049_v43 = vmul.f32 %v3150_v37, %v3148_v58  ;;  %v1361_v37 = vld [vmem:[#allocation8 + $0x48] sm:$0xff] }
 0xd3d   :  { %1051 = vrot.lane.b32.xlu1 %v1049_v43, %s3367_s0  ;;  %v1363_v43 = vld [vmem:[#allocation8 + $0x58] sm:$0xff] }
 0xdaf   :  { %v1052_v38 = vpop.permute.xlu1 %1051 }
 0xdb0   :  { %1054 = vst.msk [vmem:[#allocation3 + $0x30] sm:$0xff] %vm134_vm0, %v1052_v38  ;;  %2620 = vmatmul.mubr.msk.f32.vlgmr.msra.gmra.mrb[8].mxu1 %vm310_vm4, %v1052_v38 }
 0xdb1   :  { %1055 = vst.msk [vmem:[#allocation3 + $0x8] sm:$0xff] %vm412_vm3, %v1052_v38  ;;  %1438 = vmatprep.mubr.f32.mxu1 %v3366_v0  ;;  %2911 = vmatpush1.bf16.msra.mxu1 %v3912_v56  ;;  %v3923_v38 = vpack.c.bf16 %v1363_v43, %v1361_v37 }
 0xdb2   :  { %2913 = vmatprep.subr.bf16.mxu1 %v3917_v18 }
 0xdb8   :  { %v1164_v45 = vld [vmem:[#allocation3 + $0x8] sm:$0xff] }
 0xe83   :  { %v1130_v7 = vpop.f32.mrb[8].mxu1 }
 0xe84   :  { %v1131_v36 = vadd.f32 %v1130_v7, %v1060_v59  ;;  %v1132_v5 = vpop.f32.mrb[9].mxu1  ;;  %v1173_v59 = vld [vmem:[%s4300_s4 + $0x10] sm:$0xff]  ;;  %v1360_v7 = vld [vmem:[#allocation8 + $0x40] sm:$0xff] }
 0xe85   :  { %v1133_v12 = vadd.f32 %v1132_v5, %v1061_v51  ;;  %v1176_v51 = vld [vmem:[%s4300_s4 + $0x28] sm:$0xff]  ;;  %v2894_v57 = vpack.c.bf16 %v1173_v59, %v1171_v54  ;;  %v1165_v54 = vld [vmem:[#allocation3 + $0x10] sm:$0xff]  ;;  %v1167_v59 = vld [vmem:[#allocation3 + $0x20] sm:$0xff] }
 0xe86   :  { %v2621_v17 = vmul.f32 -1.442695, %v1131_v36  ;;  %v2896_v16 = vpack.c.bf16 %v1178_v21, %v1176_v51  ;;  %v1362_v36 = vld [vmem:[#allocation8 + $0x50] sm:$0xff]  ;;  %v1168_v51 = vld [vmem:[#allocation3 + $0x28] sm:$0xff] }
 0xe87   :  { %2895 = vmatpush1.bf16.msra.mxu0 %v2894_v57  ;;  %v2622_v27 = vmul.f32 -1.442695, %v1133_v12  ;;  %v3925_v5 = vpack.c.bf16 %v1362_v36, %v1360_v7  ;;  %v1169_v21 = vld [vmem:[#allocation3 + $0x30] sm:$0xff] }
 0xe88   :  { %3151 = vpow2.f32 %v2621_v17  ;;  %2897 = vmatprep.subr.bf16.mxu0 %v2896_v16  ;;  %v1367_v17 = vld [vmem:[#allocation8 + $0x78] sm:$0xff] }
 0xe89   :  { %3153 = vtanh.f32 %v1133_v12  ;;  %v1365_v12 = vld [vmem:[#allocation8 + $0x68] sm:$0xff] }
 0xe8b   :  { %2899 = vmatpush1.bf16.msra.mxu0 %v2898_v23 }
 0xe8c   :  { %2901 = vmatprep.subr.bf16.mxu0 %v2900_v29 }
 0xe8f   :  { %2903 = vmatpush1.bf16.msra.mxu0 %v2902_v53 }
 0xe90   :  { %2905 = vmatprep.subr.bf16.mxu0 %v2904_v62 }
 0xe92   :  { %v3152_v41 = vpop.eup %3151 }
 0xe93   :  { %v1138_v30 = vadd.f32 1.0, %v3152_v41  ;;  %v3154_v48 = vpop.eup %3153  ;;  %2907 = vmatpush1.bf16.msra.mxu0 %v2906_v2  ;;  %v3929_v41 = vpack.c.bf16 %v1367_v17, %v1365_v12 }
 0xe94   :  { %2941 = vmatprep.subr.bf16.mxu0 %v3910_v10 }
 0xe95   :  { %3155 = vrcp.f32 %v1138_v30  ;;  %v1364_v30 = vld [vmem:[#allocation8 + $0x60] sm:$0xff] }
 0xe96   :  { %3157 = vpow2.f32 %v2622_v27 }
 0xe9f   :  { %v3156_v8 = vpop.eup %3155 }
 0xea0   :  { %v1149_v14 = vmul.f32 %v3156_v8, %v3154_v48  ;;  %v3158_v28 = vpop.eup %3157  ;;  %v1148_v35 = vmul.f32 %v3156_v8, %v1047_v42  ;;  %v1358_v42 = vld [vmem:[#allocation8 + $0x30] sm:$0xff] }
 0xea1   :  { %v1145_v34 = vadd.f32 1.0, %v3158_v28  ;;  %v3919_v58 = vpack.c.bf16 %v1358_v42, %v1356_v24  ;;  %v1366_v48 = vld [vmem:[#allocation8 + $0x70] sm:$0xff]  ;;  %v1192_v28 = vrot.slane %v1187_v60, %v126_v47 }
 0xea2   :  { %1151 = vrot.lane.b32.xlu0 %v1149_v14, %s3367_s0  ;;  %v3931_v8 = vpack.c.bf16 %v1366_v48, %v1364_v30 }
 0xea3   :  { %3159 = vrcp.f32 %v1145_v34  ;;  %2915 = vmatpush1.bf16.msra.mxu1 %v3919_v58  ;;  %v1196_v34 = vrot.slane %v1187_v60, %v130_v50 }
 0xea4   :  { %2917 = vmatprep.subr.bf16.mxu1 %v3923_v38 }
 0xea7   :  { %2919 = vmatpush1.bf16.msra.mxu1 %v3925_v5 }
 0xea8   :  { %2921 = vmatprep.subr.bf16.mxu1 %v3929_v41 }
 0xeab   :  { %2923 = vmatpush1.bf16.msra.mxu1 %v3931_v8 }
 0xeac   :  { %2925 = vmatprep.subr.bf16.mxu1 %v3910_v10 }
 0xead   :  { %v3160_v20 = vpop.eup %3159 }
 0xeae   :  { %1439 = vmatmul.mubr.f32.vlgmr.msra.gmra.mrb[10].mxu1 %v3366_v0 }
 0xeaf   :  { %2927 = vmatpush1.bf16.msra.mxu1 %v3912_v56  ;;  %1545 = vmatprep.mubr.f32.mxu1 %v3366_v0 }
 0xeb0   :  { %2929 = vmatprep.subr.bf16.mxu1 %v3917_v18 }
 0xeb3   :  { %2931 = vmatpush1.bf16.msra.mxu1 %v3919_v58 }
 0xeb4   :  { %2933 = vmatprep.subr.bf16.mxu1 %v3923_v38 }
 0xeb7   :  { %2935 = vmatpush1.bf16.msra.mxu1 %v3925_v5 }
 0xeb8   :  { %2937 = vmatprep.subr.bf16.mxu1 %v3929_v41 }
 0xebb   :  { %2939 = vmatpush1.bf16.msra.mxu1 %v3931_v8 }
 0xebc   :  { %2957 = vmatprep.subr.bf16.mxu1 %v3910_v10 }
 0xf14   :  { %v1152_v39 = vpop.permute.xlu0 %1151 }
 0xf15   :  { %v1154_v22 = vadd.f32 %v1152_v39, %v1148_v35 }
 0xf17   :  { %3161 = vtanh.f32 %v1154_v22 }
 0xf21   :  { %v3162_v4 = vpop.eup %3161 }
 0xf22   :  { %v1156_v26 = vmul.f32 %v3162_v4, %v3160_v20 }
 0xf24   :  { %1158 = vrot.lane.b32.xlu1 %v1156_v26, %s3367_s0 }
 0xf81   :  { %v1440_v16 = vpop.f32.mrb[10].mxu1 }
 0xf82   :  { %v1442_v19 = vpop.f32.mrb[11].mxu1 }
 0xf96   :  { %v1159_v14 = vpop.permute.xlu1 %1158 }
 0xf97   :  { %1161 = vst.msk [vmem:[#allocation3 + $0x38] sm:$0xff] %vm134_vm0, %v1159_v14 }
 0xf98   :  { %1162 = vst.msk [vmem:[#allocation3] sm:$0xff] %vm412_vm3, %v1159_v14 }
 0xf9e   :  { %v1170_v57 = vld [vmem:[#allocation3 + $0x38] sm:$0xff] }
 0xf9f   :  { %v1163_v44 = vld [vmem:[#allocation3] sm:$0xff] }
 0xfa0   :  { %2623 = vmatmul.mubr.msk.f32.vlgmr.msra.gmra.mrb[22].mxu0 %vm310_vm4, %v1163_v44 }
 0xfa1   :  { %1293 = vmatprep.mubr.f32.mxu0 %v3366_v0  ;;  %2943 = vmatpush1.bf16.msra.mxu0 %v3912_v56 }
 0xfa2   :  { %2945 = vmatprep.subr.bf16.mxu0 %v3917_v18 }
 0xfa4   :  { %2624 = vmatmul.mubr.msk.f32.gmra.mrb[24].mxu0 %vm310_vm4, %v1164_v45 }
 0xfa5   :  { %1299 = vmatprep.mubr.f32.mxu0 %v3366_v0  ;;  %2947 = vmatpush1.bf16.msra.mxu0 %v3919_v58 }
 0xfa6   :  { %2949 = vmatprep.subr.bf16.mxu0 %v3923_v38 }
 0xfa8   :  { %2625 = vmatmul.mubr.msk.f32.gmra.mrb[26].mxu0 %vm310_vm4, %v1165_v54 }
 0xfa9   :  { %1305 = vmatprep.mubr.f32.mxu0 %v3366_v0  ;;  %2951 = vmatpush1.bf16.msra.mxu0 %v3925_v5 }
 0xfaa   :  { %2953 = vmatprep.subr.bf16.mxu0 %v3929_v41 }
 0xfac   :  { %2626 = vmatmul.mubr.msk.f32.gmra.mrb[28].mxu0 %vm310_vm4, %v1166_v55 }
 0xfad   :  { %1311 = vmatprep.mubr.f32.mxu0 %v3366_v0  ;;  %2955 = vmatpush1.bf16.msra.mxu0 %v3931_v8 }
 0xfae   :  { %2973 = vmatprep.subr.bf16.mxu0 %v3910_v10 }
 0xfb0   :  { %2627 = vmatmul.mubr.msk.f32.gmra.mrb[30].mxu0 %vm310_vm4, %v1167_v59 }
 0xfb1   :  { %1317 = vmatprep.mubr.f32.mxu0 %v3366_v0 }
 0xfb4   :  { %2628 = vmatmul.mubr.msk.f32.gmra.mrb[32].mxu0 %vm310_vm4, %v1168_v51 }
 0xfb5   :  { %1323 = vmatprep.mubr.f32.mxu0 %v3366_v0 }
 0xfb8   :  { %2629 = vmatmul.mubr.msk.f32.gmra.mrb[34].mxu0 %vm310_vm4, %v1169_v21 }
 0xfb9   :  { %1329 = vmatprep.mubr.f32.mxu0 %v3366_v0 }
 0xfbc   :  { %2630 = vmatmul.mubr.msk.f32.gmra.mrb[36].mxu0 %vm310_vm4, %v1170_v57 }
 0xfbd   :  { %1652 = vmatprep.mubr.f32.mxu0 %v3366_v0 }
0x1073   :  { %v1289_v23 = vpop.f32.mrb[22].mxu0 }
0x1074   :  { %v1291_v27 = vpop.f32.mrb[23].mxu0  ;;  %v4048_v14 = vadd.f32 %v1289_v23, %v1192_v28 }
0x1075   :  { %v4052_v54 = vadd.f32 %v1291_v27, %v1196_v34 }
0x1077   :  { %v1295_v35 = vpop.f32.mrb[24].mxu0 }
0x1078   :  { %v3976_v39 = vadd.f32 %v1295_v35, %v1192_v28  ;;  %v1297_v49 = vpop.f32.mrb[25].mxu0 }
0x1079   :  { %v3978_v61 = vadd.f32 %v1297_v49, %v1196_v34 }
0x107b   :  { %v1301_v22 = vpop.f32.mrb[26].mxu0 }
0x107c   :  { %v3980_v29 = vadd.f32 %v1301_v22, %v1192_v28  ;;  %v1303_v52 = vpop.f32.mrb[27].mxu0 }
0x107d   :  { %v3982_v15 = vadd.f32 %v1303_v52, %v1196_v34 }
0x107f   :  { %v1307_v53 = vpop.f32.mrb[28].mxu0 }
0x1080   :  { %v3984_v63 = vadd.f32 %v1307_v53, %v1192_v28  ;;  %v1309_v25 = vpop.f32.mrb[29].mxu0 }
0x1081   :  { %v3986_v47 = vadd.f32 %v1309_v25, %v1196_v34 }
0x1083   :  { %v1313_v46 = vpop.f32.mrb[30].mxu0 }
0x1084   :  { %v3988_v50 = vadd.f32 %v1313_v46, %v1192_v28  ;;  %v1315_v32 = vpop.f32.mrb[31].mxu0 }
0x1085   :  { %v3990_v62 = vadd.f32 %v1315_v32, %v1196_v34 }
0x1086   :  { %v1691_v1 = vsel %vm3628_vm1, %v3984_v63, %v3988_v50  ;;  %v1798_v2 = vsel %vm3628_vm1, %v3988_v50, %v3984_v63 }
0x1087   :  { %v1319_v20 = vpop.f32.mrb[32].mxu0  ;;  %v1692_v4 = vsel %vm3632_vm2, %v3986_v47, %v3990_v62  ;;  %v1799_v26 = vsel %vm3632_vm2, %v3990_v62, %v3986_v47 }
0x1088   :  { %v4008_v3 = vadd.f32 %v1319_v20, %v1192_v28  ;;  %v1321_v6 = vpop.f32.mrb[33].mxu0 }
0x1089   :  { %v4010_v13 = vadd.f32 %v1321_v6, %v1196_v34 }
0x108a   :  { %v1584_v31 = vsel %vm3628_vm1, %v3980_v29, %v4008_v3  ;;  %v1905_v33 = vsel %vm3628_vm1, %v4008_v3, %v3980_v29 }
0x108b   :  { %v1325_v40 = vpop.f32.mrb[34].mxu0  ;;  %v1585_v24 = vsel %vm3632_vm2, %v3982_v15, %v4010_v13  ;;  %v1906_v42 = vsel %vm3632_vm2, %v4010_v13, %v3982_v15 }
0x108c   :  { %v4028_v37 = vadd.f32 %v1325_v40, %v1192_v28  ;;  %v1327_v43 = vpop.f32.mrb[35].mxu0 }
0x108d   :  { %v4030_v7 = vadd.f32 %v1327_v43, %v1196_v34 }
0x108e   :  { %v1477_v36 = vsel %vm3628_vm1, %v3976_v39, %v4028_v37  ;;  %v2012_v12 = vsel %vm3628_vm1, %v4028_v37, %v3976_v39 }
0x108f   :  { %v1331_v17 = vpop.f32.mrb[36].mxu0  ;;  %v1478_v30 = vsel %vm3632_vm2, %v3978_v61, %v4030_v7  ;;  %v2013_v48 = vsel %vm3632_vm2, %v4030_v7, %v3978_v61 }
0x1090   :  { %v4050_v44 = vadd.f32 %v1331_v17, %v1192_v28  ;;  %v1333_v45 = vpop.f32.mrb[37].mxu0 }
0x1091   :  { %v4054_v55 = vadd.f32 %v1333_v45, %v1196_v34 }
0x1092   :  { %v1372_v59 = vsel %vm3628_vm1, %v4048_v14, %v4050_v44  ;;  %v2119_v51 = vsel %vm3628_vm1, %v4050_v44, %v4048_v14  ;;  %v2238_v14 = vld [vmem:[%s4303_s7] sm:$0xff]  ;;  %v2240_v44 = vld [vmem:[%s4303_s7 + $0x10] sm:$0xff] }
0x1093   :  { %v1441_v21 = vadd.f32 %v1440_v16, %v1372_v59  ;;  %v1373_v57 = vsel %vm3632_vm2, %v4052_v54, %v4054_v55  ;;  %v2120_v60 = vsel %vm3632_vm2, %v4054_v55, %v4052_v54  ;;  %v3036_v54 = vpack.c.bf16 %v2239_v11, %v2238_v14  ;;  %v2241_v55 = vld [vmem:[%s4303_s7 + $0x18] sm:$0xff] }
0x1094   :  { %v1443_v23 = vadd.f32 %v1442_v19, %v1373_v57 }
0x1095   :  { %v2631_v27 = vmul.f32 -1.442695, %v1441_v21 }
0x1096   :  { %v2632_v22 = vmul.f32 -1.442695, %v1443_v23 }
0x1097   :  { %3163 = vpow2.f32 %v2631_v27 }
0x1098   :  { %3165 = vtanh.f32 %v1443_v23 }
0x10a1   :  { %v3164_v28 = vpop.eup %3163 }
0x10a2   :  { %v1448_v34 = vadd.f32 1.0, %v3164_v28  ;;  %v3166_v35 = vpop.eup %3165 }
0x10a4   :  { %3167 = vrcp.f32 %v1448_v34 }
0x10a5   :  { %3169 = vpow2.f32 %v2632_v22 }
0x10ae   :  { %v3168_v49 = vpop.eup %3167 }
0x10af   :  { %v1459_v16 = vmul.f32 %v3168_v49, %v3166_v35  ;;  %v3170_v52 = vpop.eup %3169  ;;  %v1458_v25 = vmul.f32 0.0, %v3168_v49 }
0x10b0   :  { %v1455_v53 = vadd.f32 1.0, %v3170_v52 }
0x10b1   :  { %1461 = vrot.lane.b32.xlu0 %v1459_v16, %s3367_s0 }
0x10b2   :  { %3171 = vrcp.f32 %v1455_v53 }
0x10bc   :  { %v3172_v19 = vpop.eup %3171 }
0x1123   :  { %v1462_v46 = vpop.permute.xlu0 %1461 }
0x1124   :  { %v1464_v32 = vadd.f32 %v1462_v46, %v1458_v25 }
0x1126   :  { %3173 = vtanh.f32 %v1464_v32 }
0x1130   :  { %v3174_v20 = vpop.eup %3173 }
0x1131   :  { %v1466_v6 = vmul.f32 %v3174_v20, %v3172_v19 }
0x1133   :  { %1468 = vrot.lane.b32.xlu1 %v1466_v6, %s3367_s0 }
0x11a5   :  { %v1469_v40 = vpop.permute.xlu1 %1468 }
0x11a6   :  { %1471 = vst.msk [vmem:[#allocation3] sm:$0xff] %vm134_vm0, %v1469_v40  ;;  %2633 = vmatmul.mubr.msk.f32.vlgmr.msra.gmra.mrb[12].mxu1 %vm310_vm4, %v1469_v40 }
0x11a7   :  { %1472 = vst.msk [vmem:[#allocation3 + $0x38] sm:$0xff] %vm412_vm3, %v1469_v40  ;;  %2959 = vmatpush1.bf16.msra.mxu1 %v3912_v56  ;;  %1759 = vmatprep.mubr.f32.mxu1 %v3366_v0 }
0x11a8   :  { %2961 = vmatprep.subr.bf16.mxu1 %v3917_v18 }
0x11ab   :  { %2963 = vmatpush1.bf16.msra.mxu1 %v3919_v58 }
0x11ac   :  { %2965 = vmatprep.subr.bf16.mxu1 %v3923_v38 }
0x11af   :  { %2967 = vmatpush1.bf16.msra.mxu1 %v3925_v5 }
0x11b0   :  { %2969 = vmatprep.subr.bf16.mxu1 %v3929_v41 }
0x11b3   :  { %2971 = vmatpush1.bf16.msra.mxu1 %v3931_v8 }
0x11b4   :  { %2989 = vmatprep.subr.bf16.mxu1 %v3910_v10 }
0x1279   :  { %v1547_v43 = vpop.f32.mrb[12].mxu1 }
0x127a   :  { %v1548_v17 = vadd.f32 %v1547_v43, %v1477_v36  ;;  %v1549_v45 = vpop.f32.mrb[13].mxu1 }
0x127b   :  { %v1550_v59 = vadd.f32 %v1549_v45, %v1478_v30 }
0x127c   :  { %v2634_v21 = vmul.f32 -1.442695, %v1548_v17 }
0x127d   :  { %v2635_v35 = vmul.f32 -1.442695, %v1550_v59 }
0x127e   :  { %3175 = vpow2.f32 %v2634_v21 }
0x127f   :  { %3177 = vtanh.f32 %v1550_v59 }
0x1288   :  { %v3176_v57 = vpop.eup %3175 }
0x1289   :  { %v1555_v23 = vadd.f32 1.0, %v3176_v57  ;;  %v3178_v27 = vpop.eup %3177 }
0x128b   :  { %3179 = vrcp.f32 %v1555_v23 }
0x128c   :  { %3181 = vpow2.f32 %v2635_v35 }
0x1295   :  { %v3180_v28 = vpop.eup %3179 }
0x1296   :  { %v1566_v34 = vmul.f32 %v3180_v28, %v3178_v27  ;;  %v3182_v49 = vpop.eup %3181  ;;  %v1565_v22 = vmul.f32 %v3180_v28, %v1464_v32 }
0x1297   :  { %v1562_v16 = vadd.f32 1.0, %v3182_v49 }
0x1298   :  { %1568 = vrot.lane.b32.xlu0 %v1566_v34, %s3367_s0 }
0x1299   :  { %3183 = vrcp.f32 %v1562_v16 }
0x12a3   :  { %v3184_v30 = vpop.eup %3183 }
0x130a   :  { %v1569_v52 = vpop.permute.xlu0 %1568 }
0x130b   :  { %v1571_v36 = vadd.f32 %v1569_v52, %v1565_v22 }
0x130d   :  { %3185 = vtanh.f32 %v1571_v36 }
0x1317   :  { %v3186_v53 = vpop.eup %3185 }
0x1318   :  { %v1573_v25 = vmul.f32 %v3186_v53, %v3184_v30 }
0x131a   :  { %1575 = vrot.lane.b32.xlu1 %v1573_v25, %s3367_s0 }
0x138c   :  { %v1576_v46 = vpop.permute.xlu1 %1575 }
0x138d   :  { %1578 = vst.msk [vmem:[#allocation3 + $0x8] sm:$0xff] %vm134_vm0, %v1576_v46  ;;  %2636 = vmatmul.mubr.msk.f32.vlgmr.msra.gmra.mrb[38].mxu0 %vm310_vm4, %v1576_v46 }
0x138e   :  { %1579 = vst.msk [vmem:[#allocation3 + $0x30] sm:$0xff] %vm412_vm3, %v1576_v46  ;;  %2975 = vmatpush1.bf16.msra.mxu0 %v3912_v56  ;;  %1866 = vmatprep.mubr.f32.mxu0 %v3366_v0 }
0x138f   :  { %2977 = vmatprep.subr.bf16.mxu0 %v3917_v18 }
0x1392   :  { %2979 = vmatpush1.bf16.msra.mxu0 %v3919_v58 }
0x1393   :  { %2981 = vmatprep.subr.bf16.mxu0 %v3923_v38 }
0x1396   :  { %2983 = vmatpush1.bf16.msra.mxu0 %v3925_v5 }
0x1397   :  { %2985 = vmatprep.subr.bf16.mxu0 %v3929_v41 }
0x139a   :  { %2987 = vmatpush1.bf16.msra.mxu0 %v3931_v8 }
0x139b   :  { %3005 = vmatprep.subr.bf16.mxu0 %v3910_v10 }
0x1460   :  { %v1654_v32 = vpop.f32.mrb[38].mxu0 }
0x1461   :  { %v1655_v19 = vadd.f32 %v1654_v32, %v1584_v31  ;;  %v1656_v20 = vpop.f32.mrb[39].mxu0 }
0x1462   :  { %v1657_v6 = vadd.f32 %v1656_v20, %v1585_v24 }
0x1463   :  { %v2637_v40 = vmul.f32 -1.442695, %v1655_v19 }
0x1464   :  { %v2638_v57 = vmul.f32 -1.442695, %v1657_v6 }
0x1465   :  { %3187 = vpow2.f32 %v2637_v40 }
0x1466   :  { %3189 = vtanh.f32 %v1657_v6 }
0x146f   :  { %v3188_v43 = vpop.eup %3187 }
0x1470   :  { %v1662_v17 = vadd.f32 1.0, %v3188_v43  ;;  %v3190_v45 = vpop.eup %3189 }
0x1472   :  { %3191 = vrcp.f32 %v1662_v17 }
0x1473   :  { %3193 = vpow2.f32 %v2638_v57 }
0x147c   :  { %v3192_v59 = vpop.eup %3191 }
0x147d   :  { %v1673_v21 = vmul.f32 %v3192_v59, %v3190_v45  ;;  %v3194_v31 = vpop.eup %3193  ;;  %v1672_v27 = vmul.f32 %v3192_v59, %v1571_v36 }
0x147e   :  { %v1669_v23 = vadd.f32 1.0, %v3194_v31 }
0x147f   :  { %1675 = vrot.lane.b32.xlu0 %v1673_v21, %s3367_s0 }
0x1480   :  { %3195 = vrcp.f32 %v1669_v23 }
0x148a   :  { %v3196_v24 = vpop.eup %3195 }
0x14f1   :  { %v1676_v28 = vpop.permute.xlu0 %1675 }
0x14f2   :  { %v1678_v34 = vadd.f32 %v1676_v28, %v1672_v27 }
0x14f4   :  { %3197 = vtanh.f32 %v1678_v34 }
0x14fe   :  { %v3198_v35 = vpop.eup %3197 }
0x14ff   :  { %v1680_v49 = vmul.f32 %v3198_v35, %v3196_v24 }
0x1501   :  { %1682 = vrot.lane.b32.xlu1 %v1680_v49, %s3367_s0 }
0x1573   :  { %v1683_v16 = vpop.permute.xlu1 %1682 }
0x1574   :  { %1685 = vst.msk [vmem:[#allocation3 + $0x10] sm:$0xff] %vm134_vm0, %v1683_v16  ;;  %2639 = vmatmul.mubr.msk.f32.vlgmr.msra.gmra.mrb[14].mxu1 %vm310_vm4, %v1683_v16 }
0x1575   :  { %1686 = vst.msk [vmem:[#allocation3 + $0x28] sm:$0xff] %vm412_vm3, %v1683_v16  ;;  %2991 = vmatpush1.bf16.msra.mxu1 %v3912_v56  ;;  %1973 = vmatprep.mubr.f32.mxu1 %v3366_v0 }
0x1576   :  { %2993 = vmatprep.subr.bf16.mxu1 %v3917_v18 }
0x1579   :  { %2995 = vmatpush1.bf16.msra.mxu1 %v3919_v58 }
0x157a   :  { %2997 = vmatprep.subr.bf16.mxu1 %v3923_v38 }
0x157d   :  { %2999 = vmatpush1.bf16.msra.mxu1 %v3925_v5 }
0x157e   :  { %3001 = vmatprep.subr.bf16.mxu1 %v3929_v41 }
0x1581   :  { %3003 = vmatpush1.bf16.msra.mxu1 %v3931_v8 }
0x1582   :  { %3021 = vmatprep.subr.bf16.mxu1 %v3910_v10 }
0x1647   :  { %v1761_v22 = vpop.f32.mrb[14].mxu1 }
0x1648   :  { %v1762_v52 = vadd.f32 %v1761_v22, %v1691_v1  ;;  %v1763_v36 = vpop.f32.mrb[15].mxu1 }
0x1649   :  { %v1764_v30 = vadd.f32 %v1763_v36, %v1692_v4 }
0x164a   :  { %v2640_v53 = vmul.f32 -1.442695, %v1762_v52 }
0x164b   :  { %v2641_v20 = vmul.f32 -1.442695, %v1764_v30 }
0x164c   :  { %3199 = vpow2.f32 %v2640_v53 }
0x164d   :  { %3201 = vtanh.f32 %v1764_v30 }
0x1656   :  { %v3200_v25 = vpop.eup %3199 }
0x1657   :  { %v1769_v46 = vadd.f32 1.0, %v3200_v25  ;;  %v3202_v10 = vpop.eup %3201 }
0x1659   :  { %3203 = vrcp.f32 %v1769_v46 }
0x165a   :  { %3205 = vpow2.f32 %v2641_v20 }
0x1663   :  { %v3204_v32 = vpop.eup %3203 }
0x1664   :  { %v1780_v19 = vmul.f32 %v3204_v32, %v3202_v10  ;;  %v3206_v1 = vpop.eup %3205  ;;  %v1779_v40 = vmul.f32 %v3204_v32, %v1678_v34 }
0x1665   :  { %v1776_v6 = vadd.f32 1.0, %v3206_v1 }
0x1666   :  { %1782 = vrot.lane.b32.xlu0 %v1780_v19, %s3367_s0 }
0x1667   :  { %3207 = vrcp.f32 %v1776_v6 }
0x1671   :  { %v3208_v4 = vpop.eup %3207 }
0x16d8   :  { %v1783_v43 = vpop.permute.xlu0 %1782 }
0x16d9   :  { %v1785_v17 = vadd.f32 %v1783_v43, %v1779_v40 }
0x16db   :  { %3209 = vtanh.f32 %v1785_v17 }
0x16e5   :  { %v3210_v45 = vpop.eup %3209 }
0x16e6   :  { %v1787_v59 = vmul.f32 %v3210_v45, %v3208_v4 }
0x16e8   :  { %1789 = vrot.lane.b32.xlu1 %v1787_v59, %s3367_s0 }
0x175a   :  { %v1790_v21 = vpop.permute.xlu1 %1789 }
0x175b   :  { %1792 = vst.msk [vmem:[#allocation3 + $0x18] sm:$0xff] %vm134_vm0, %v1790_v21  ;;  %2642 = vmatmul.mubr.msk.f32.vlgmr.msra.gmra.mrb[40].mxu0 %vm310_vm4, %v1790_v21 }
0x175c   :  { %1793 = vst.msk [vmem:[#allocation3 + $0x20] sm:$0xff] %vm412_vm3, %v1790_v21  ;;  %3007 = vmatpush1.bf16.msra.mxu0 %v3912_v56  ;;  %2080 = vmatprep.mubr.f32.mxu0 %v3366_v0 }
0x175d   :  { %3009 = vmatprep.subr.bf16.mxu0 %v3917_v18 }
0x1760   :  { %3011 = vmatpush1.bf16.msra.mxu0 %v3919_v58 }
0x1761   :  { %3013 = vmatprep.subr.bf16.mxu0 %v3923_v38 }
0x1764   :  { %3015 = vmatpush1.bf16.msra.mxu0 %v3925_v5 }
0x1765   :  { %3017 = vmatprep.subr.bf16.mxu0 %v3929_v41 }
0x1768   :  { %3019 = vmatpush1.bf16.msra.mxu0 %v3931_v8 }
0x1769   :  { %3037 = vmatprep.subr.bf16.mxu0 %v3036_v54 }
0x182e   :  { %v1868_v57 = vpop.f32.mrb[40].mxu0 }
0x182f   :  { %v1869_v31 = vadd.f32 %v1868_v57, %v1798_v2  ;;  %v1870_v23 = vpop.f32.mrb[41].mxu0 }
0x1830   :  { %v1871_v27 = vadd.f32 %v1870_v23, %v1799_v26 }
0x1831   :  { %v2643_v28 = vmul.f32 -1.442695, %v1869_v31 }
0x1832   :  { %v2644_v63 = vmul.f32 -1.442695, %v1871_v27 }
0x1833   :  { %3211 = vpow2.f32 %v2643_v28 }
0x1834   :  { %3213 = vtanh.f32 %v1871_v27 }
0x183d   :  { %v3212_v34 = vpop.eup %3211 }
0x183e   :  { %v1876_v24 = vadd.f32 1.0, %v3212_v34  ;;  %v3214_v35 = vpop.eup %3213 }
0x1840   :  { %3215 = vrcp.f32 %v1876_v24 }
0x1841   :  { %3217 = vpow2.f32 %v2644_v63 }
0x184a   :  { %v3216_v49 = vpop.eup %3215 }
0x184b   :  { %v1887_v16 = vmul.f32 %v3216_v49, %v3214_v35  ;;  %v3218_v50 = vpop.eup %3217  ;;  %v1886_v22 = vmul.f32 %v3216_v49, %v1785_v17 }
0x184c   :  { %v1883_v2 = vadd.f32 1.0, %v3218_v50 }
0x184d   :  { %1889 = vrot.lane.b32.xlu0 %v1887_v16, %s3367_s0 }
0x184e   :  { %3219 = vrcp.f32 %v1883_v2 }
0x1858   :  { %v3220_v47 = vpop.eup %3219 }
0x18bf   :  { %v1890_v52 = vpop.permute.xlu0 %1889 }
0x18c0   :  { %v1892_v36 = vadd.f32 %v1890_v52, %v1886_v22 }
0x18c2   :  { %3221 = vtanh.f32 %v1892_v36 }
0x18cc   :  { %v3222_v62 = vpop.eup %3221 }
0x18cd   :  { %v1894_v26 = vmul.f32 %v3222_v62, %v3220_v47 }
0x18cf   :  { %1896 = vrot.lane.b32.xlu1 %v1894_v26, %s3367_s0  ;;  %v2242_v26 = vld [vmem:[%s4303_s7 + $0x20] sm:$0xff] }
0x1941   :  { %v1897_v30 = vpop.permute.xlu1 %1896 }
0x1942   :  { %1899 = vst.msk [vmem:[#allocation3 + $0x20] sm:$0xff] %vm134_vm0, %v1897_v30  ;;  %2645 = vmatmul.mubr.msk.f32.vlgmr.msra.gmra.mrb[16].mxu1 %vm310_vm4, %v1897_v30 }
0x1943   :  { %1900 = vst.msk [vmem:[#allocation3 + $0x18] sm:$0xff] %vm412_vm3, %v1897_v30  ;;  %3023 = vmatpush1.bf16.msra.mxu1 %v3912_v56  ;;  %2187 = vmatprep.mubr.f32.mxu1 %v3366_v0  ;;  %v2243_v30 = vld [vmem:[%s4303_s7 + $0x28] sm:$0xff] }
0x1944   :  { %3025 = vmatprep.subr.bf16.mxu1 %v3917_v18 }
0x1947   :  { %3027 = vmatpush1.bf16.msra.mxu1 %v3919_v58 }
0x1948   :  { %3029 = vmatprep.subr.bf16.mxu1 %v3923_v38 }
0x194b   :  { %3031 = vmatpush1.bf16.msra.mxu1 %v3925_v5 }
0x194c   :  { %3033 = vmatprep.subr.bf16.mxu1 %v3929_v41 }
0x194f   :  { %3035 = vmatpush1.bf16.msra.mxu1 %v3931_v8 }
0x1a15   :  { %v1975_v53 = vpop.f32.mrb[16].mxu1 }
0x1a16   :  { %v1976_v56 = vadd.f32 %v1975_v53, %v1905_v33  ;;  %v1977_v0 = vpop.f32.mrb[17].mxu1  ;;  %v2244_v53 = vld [vmem:[%s4303_s7 + $0x30] sm:$0xff] }
0x1a17   :  { %v1978_v18 = vadd.f32 %v1977_v0, %v1906_v42  ;;  %v2245_v0 = vld [vmem:[%s4303_s7 + $0x38] sm:$0xff] }
0x1a18   :  { %v2646_v58 = vmul.f32 -1.442695, %v1976_v56  ;;  %v3044_v56 = vpack.c.bf16 %v2243_v30, %v2242_v26 }
0x1a19   :  { %v2647_v29 = vmul.f32 -1.442695, %v1978_v18 }
0x1a1a   :  { %3223 = vpow2.f32 %v2646_v58 }
0x1a1b   :  { %3225 = vtanh.f32 %v1978_v18  ;;  %v3048_v18 = vpack.c.bf16 %v2245_v0, %v2244_v53 }
0x1a24   :  { %v3224_v38 = vpop.eup %3223 }
0x1a25   :  { %v1983_v5 = vadd.f32 1.0, %v3224_v38  ;;  %v3226_v41 = vpop.eup %3225 }
0x1a27   :  { %3227 = vrcp.f32 %v1983_v5 }
0x1a28   :  { %3229 = vpow2.f32 %v2647_v29 }
0x1a31   :  { %v3228_v8 = vpop.eup %3227 }
0x1a32   :  { %v1994_v25 = vmul.f32 %v3228_v8, %v3226_v41  ;;  %v3230_v3 = vpop.eup %3229  ;;  %v1993_v46 = vmul.f32 %v3228_v8, %v1892_v36  ;;  %v2390_v41 = vld [vmem:[%s4305_s9] sm:$0xff]  ;;  %v2391_v8 = vld [vmem:[%s4305_s9 + $0x8] sm:$0xff] }
0x1a33   :  { %v1990_v33 = vadd.f32 1.0, %v3230_v3 }
0x1a34   :  { %1996 = vrot.lane.b32.xlu0 %v1994_v25, %s3367_s0  ;;  %v3052_v25 = vpack.c.bf16 %v2391_v8, %v2390_v41 }
0x1a35   :  { %3231 = vrcp.f32 %v1990_v33 }
0x1a36   :  { %3053 = vmatprep.subr.bf16.mxu1 %v3052_v25 }
0x1a3f   :  { %v3232_v15 = vpop.eup %3231 }
0x1aa6   :  { %v1997_v10 = vpop.permute.xlu0 %1996 }
0x1aa7   :  { %v1999_v32 = vadd.f32 %v1997_v10, %v1993_v46 }
0x1aa9   :  { %3233 = vtanh.f32 %v1999_v32 }
0x1ab3   :  { %v3234_v13 = vpop.eup %3233 }
0x1ab4   :  { %v2001_v42 = vmul.f32 %v3234_v13, %v3232_v15  ;;  %v2225_v13 = vld [vmem:[#allocation3 + $0x18] sm:$0xff] }
0x1ab6   :  { %2003 = vrot.lane.b32.xlu1 %v2001_v42, %s3367_s0  ;;  %v2226_v42 = vld [vmem:[#allocation3 + $0x20] sm:$0xff] }
0x1b28   :  { %v2004_v19 = vpop.permute.xlu1 %2003 }
0x1b29   :  { %2006 = vst.msk [vmem:[#allocation3 + $0x28] sm:$0xff] %vm134_vm0, %v2004_v19  ;;  %2648 = vmatmul.mubr.msk.f32.vlgmr.msra.gmra.mrb[42].mxu0 %vm310_vm4, %v2004_v19 }
0x1b2a   :  { %2007 = vst.msk [vmem:[#allocation3 + $0x10] sm:$0xff] %vm412_vm3, %v2004_v19  ;;  %3039 = vmatpush3.bf16.msra.mxu0 %v3036_v54  ;;  %v2233_v19 = vmax.f32 %v2225_v13, 0.0 }
0x1b31   :  { %v2224_v46 = vld [vmem:[#allocation3 + $0x10] sm:$0xff] }
0x1b32   :  { %v2232_v15 = vmax.f32 %v2224_v46, 0.0 }
0x1bfc   :  { %v2082_v20 = vpop.f32.mrb[42].mxu0 }
0x1bfd   :  { %v2083_v1 = vadd.f32 %v2082_v20, %v2012_v12  ;;  %v2084_v6 = vpop.f32.mrb[43].mxu0  ;;  %v2234_v20 = vmax.f32 %v2226_v42, 0.0 }
0x1bfe   :  { %v2085_v40 = vadd.f32 %v2084_v6, %v2013_v48 }
0x1bff   :  { %v2649_v43 = vmul.f32 -1.442695, %v2083_v1  ;;  %v2227_v1 = vld [vmem:[#allocation3 + $0x28] sm:$0xff] }
0x1c00   :  { %v2650_v39 = vmul.f32 -1.442695, %v2085_v40 }
0x1c01   :  { %3235 = vpow2.f32 %v2649_v43 }
0x1c02   :  { %3237 = vtanh.f32 %v2085_v40  ;;  %v2235_v40 = vmax.f32 %v2227_v1, 0.0 }
0x1c0b   :  { %v3236_v17 = vpop.eup %3235 }
0x1c0c   :  { %v2090_v4 = vadd.f32 1.0, %v3236_v17  ;;  %v3238_v45 = vpop.eup %3237 }
0x1c0e   :  { %3239 = vrcp.f32 %v2090_v4 }
0x1c0f   :  { %3241 = vpow2.f32 %v2650_v39  ;;  %v2654_v39 = vld [vmem:[%s4304_s8] ss:$0 sm:$0xff] }
0x1c18   :  { %v3240_v59 = vpop.eup %3239 }
0x1c19   :  { %v2101_v21 = vmul.f32 %v3240_v59, %v3238_v45  ;;  %v3242_v37 = vpop.eup %3241  ;;  %v2100_v57 = vmul.f32 %v3240_v59, %v1999_v32  ;;  %v2392_v45 = vld [vmem:[%s4305_s9 + $0x10] sm:$0xff]  ;;  %v2393_v59 = vld [vmem:[%s4305_s9 + $0x18] sm:$0xff] }
0x1c1a   :  { %v2097_v12 = vadd.f32 1.0, %v3242_v37 }
0x1c1b   :  { %2103 = vrot.lane.b32.xlu0 %v2101_v21, %s3367_s0  ;;  %v3056_v21 = vpack.c.bf16 %v2393_v59, %v2392_v45 }
0x1c1c   :  { %3243 = vrcp.f32 %v2097_v12 }
0x1c26   :  { %v3244_v61 = vpop.eup %3243 }
0x1c8d   :  { %v2104_v31 = vpop.permute.xlu0 %2103 }
0x1c8e   :  { %v2106_v23 = vadd.f32 %v2104_v31, %v2100_v57 }
0x1c90   :  { %3245 = vtanh.f32 %v2106_v23 }
0x1c9a   :  { %v3246_v7 = vpop.eup %3245 }
0x1c9b   :  { %v2108_v48 = vmul.f32 %v3246_v7, %v3244_v61 }
0x1c9d   :  { %2110 = vrot.lane.b32.xlu1 %v2108_v48, %s3367_s0 }
0x1d0f   :  { %v2111_v27 = vpop.permute.xlu1 %2110 }
0x1d10   :  { %2113 = vst.msk [vmem:[#allocation3 + $0x30] sm:$0xff] %vm134_vm0, %v2111_v27  ;;  %2651 = vmatmul.mubr.msk.f32.vlgmr.msra.gmra.mrb[18].mxu1 %vm310_vm4, %v2111_v27 }
0x1d11   :  { %2114 = vst.msk [vmem:[#allocation3 + $0x8] sm:$0xff] %vm412_vm3, %v2111_v27  ;;  %3055 = vmatpush3.bf16.msra.mxu1 %v3052_v25 }
0x1d12   :  { %3057 = vmatprep.subr.bf16.mxu1 %v3056_v21 }
0x1d15   :  { %3059 = vmatpush3.bf16.msra.mxu1 %v3056_v21 }
0x1d17   :  { %v2228_v6 = vld [vmem:[#allocation3 + $0x30] sm:$0xff] }
0x1d18   :  { %v2223_v3 = vld [vmem:[#allocation3 + $0x8] sm:$0xff]  ;;  %v2236_v43 = vmax.f32 %v2228_v6, 0.0 }
0x1d19   :  { %v2231_v32 = vmax.f32 %v2223_v3, 0.0 }
0x1de3   :  { %v2189_v28 = vpop.f32.mrb[18].mxu1 }
0x1de4   :  { %v2190_v34 = vadd.f32 %v2189_v28, %v2119_v51  ;;  %v2191_v24 = vpop.f32.mrb[19].mxu1  ;;  %v3040_v51 = vpack.c.bf16 %v2241_v55, %v2240_v44 }
0x1de5   :  { %v2192_v35 = vadd.f32 %v2191_v24, %v2120_v60 }
0x1de6   :  { %v2652_v49 = vmul.f32 -1.442695, %v2190_v34  ;;  %3041 = vmatprep.subr.bf16.mxu0 %v3040_v51 }
0x1de7   :  { %3043 = vmatpush3.bf16.msra.mxu0 %v3040_v51  ;;  %v2653_v60 = vmul.f32 -1.442695, %v2192_v35  ;;  %v2663_v51 = vld [vmem:[%s4306_s10] ss:$0 sm:$0xff] }
0x1de8   :  { %3247 = vpow2.f32 %v2652_v49  ;;  %3045 = vmatprep.subr.bf16.mxu0 %v3044_v56 }
0x1de9   :  { %3249 = vtanh.f32 %v2192_v35 }
0x1deb   :  { %3047 = vmatpush3.bf16.msra.mxu0 %v3044_v56 }
0x1dec   :  { %3049 = vmatprep.subr.bf16.mxu0 %v3048_v18 }
0x1def   :  { %3051 = vmatpush3.bf16.msra.mxu0 %v3048_v18 }
0x1df2   :  { %v3248_v16 = vpop.eup %3247 }
0x1df3   :  { %v2197_v63 = vadd.f32 1.0, %v3248_v16  ;;  %v3250_v50 = vpop.eup %3249 }
0x1df5   :  { %3251 = vrcp.f32 %v2197_v63 }
0x1df6   :  { %3253 = vpow2.f32 %v2653_v60 }
0x1dff   :  { %v3252_v2 = vpop.eup %3251 }
0x1e00   :  { %v2208_v9 = vmul.f32 %v3252_v2, %v3250_v50  ;;  %v3254_v22 = vpop.eup %3253  ;;  %v2207_v36 = vmul.f32 %v3252_v2, %v2106_v23 }
0x1e01   :  { %v2204_v52 = vadd.f32 1.0, %v3254_v22 }
0x1e02   :  { %2210 = vrot.lane.b32.xlu0 %v2208_v9, %s3367_s0 }
0x1e03   :  { %3255 = vrcp.f32 %v2204_v52 }
0x1e0d   :  { %v3256_v58 = vpop.eup %3255 }
0x1e74   :  { %v2211_v47 = vpop.permute.xlu0 %2210 }
0x1e75   :  { %v2213_v62 = vadd.f32 %v2211_v47, %v2207_v36 }
0x1e77   :  { %3257 = vtanh.f32 %v2213_v62 }
0x1e81   :  { %v3258_v38 = vpop.eup %3257 }
0x1e82   :  { %v2215_v5 = vmul.f32 %v3258_v38, %v3256_v58 }
0x1e84   :  { %2217 = vrot.lane.b32.xlu1 %v2215_v5, %s3367_s0 }
0x1ef6   :  { %v2218_v29 = vpop.permute.xlu1 %2217 }
0x1ef7   :  { %2220 = vst.msk [vmem:[#allocation3 + $0x38] sm:$0xff] %vm134_vm0, %v2218_v29 }
0x1ef8   :  { %2221 = vst.msk [vmem:[#allocation3] sm:$0xff] %vm412_vm3, %v2218_v29 }
0x1efe   :  { %v2229_v17 = vld [vmem:[#allocation3 + $0x38] sm:$0xff] }
0x1eff   :  { %v2222_v33 = vld [vmem:[#allocation3] sm:$0xff]  ;;  %v2237_v4 = vmax.f32 %v2229_v17, 0.0 }
0x1f00   :  { %v2230_v10 = vmax.f32 %v2222_v33, 0.0 }
0x1f02   :  { %2724 = vmatprep.mubr.msk.f32.mxu0 %vm310_vm4, %v2230_v10 }
0x1f03   :  { %2725 = vmatmul.mubr.msk.f32.vlgmr.msra.gmra.mrb[44].mxu0 %vm310_vm4, %v2231_v32 }
0x1f04   :  { %2727 = vmatprep.mubr.msk.f32.mxu0 %vm310_vm4, %v2232_v15 }
0x1f07   :  { %2728 = vmatmul.mubr.msk.f32.gmra.mrb[46].mxu0 %vm310_vm4, %v2233_v19 }
0x1f08   :  { %2730 = vmatprep.mubr.msk.f32.mxu0 %vm310_vm4, %v2234_v20 }
0x1f0b   :  { %2731 = vmatmul.mubr.msk.f32.gmra.mrb[48].mxu0 %vm310_vm4, %v2235_v40 }
0x1f0c   :  { %2733 = vmatprep.mubr.msk.f32.mxu0 %vm310_vm4, %v2236_v43 }
0x1f0f   :  { %2734 = vmatmul.mubr.msk.f32.gmra.mrb[50].mxu0 %vm310_vm4, %v2237_v4 }
0x1fd6   :  { %v2726_v37 = vpop.f32.mrb[44].mxu0 }
0x1fd7   :  { %v2349_v12 = vadd.f32 %v2726_v37, %v2654_v39  ;;  %v2343_v57 = vpop.f32.mrb[45].mxu0 }
0x1fd8   :  { %v2344_v31 = vadd.f32 %v2654_v39, %v2343_v57 }
0x1fd9   :  { %v2383_v7 = vmax.f32 %v2349_v12, 0.0 }
0x1fda   :  { %v2382_v23 = vmax.f32 %v2344_v31, 0.0  ;;  %v2729_v61 = vpop.f32.mrb[46].mxu0 }
0x1fdb   :  { %v2359_v48 = vadd.f32 %v2729_v61, %v2654_v39  ;;  %v2353_v27 = vpop.f32.mrb[47].mxu0 }
0x1fdc   :  { %v2354_v28 = vadd.f32 %v2654_v39, %v2353_v27  ;;  %2744 = vmatprep.mubr.msk.f32.mxu1 %vm134_vm0, %v2382_v23 }
0x1fdd   :  { %2745 = vmatmul.mubr.msk.f32.vlgmr.msra.gmra.mrb[20].mxu1 %vm134_vm0, %v2383_v7  ;;  %v2385_v35 = vmax.f32 %v2359_v48, 0.0 }
0x1fde   :  { %v2384_v34 = vmax.f32 %v2354_v28, 0.0  ;;  %v2732_v24 = vpop.f32.mrb[48].mxu0 }
0x1fdf   :  { %v2369_v49 = vadd.f32 %v2732_v24, %v2654_v39  ;;  %v2363_v16 = vpop.f32.mrb[49].mxu0 }
0x1fe0   :  { %v2364_v63 = vadd.f32 %v2654_v39, %v2363_v16  ;;  %2747 = vmatprep.mubr.msk.f32.mxu1 %vm134_vm0, %v2384_v34 }
0x1fe1   :  { %2748 = vmatmul.mubr.msk.f32.gmra.mrb[22].mxu1 %vm134_vm0, %v2385_v35  ;;  %v2387_v9 = vmax.f32 %v2369_v49, 0.0 }
0x1fe2   :  { %v2386_v50 = vmax.f32 %v2364_v63, 0.0  ;;  %v2735_v2 = vpop.f32.mrb[50].mxu0 }
0x1fe3   :  { %v2379_v14 = vadd.f32 %v2735_v2, %v2654_v39  ;;  %v2373_v11 = vpop.f32.mrb[51].mxu0 }
0x1fe4   :  { %v2374_v44 = vadd.f32 %v2654_v39, %v2373_v11  ;;  %2750 = vmatprep.mubr.msk.f32.mxu1 %vm134_vm0, %v2386_v50 }
0x1fe5   :  { %2751 = vmatmul.mubr.msk.f32.gmra.mrb[24].mxu1 %vm134_vm0, %v2387_v9  ;;  %v2389_v55 = vmax.f32 %v2379_v14, 0.0 }
0x1fe6   :  { %v2388_v54 = vmax.f32 %v2374_v44, 0.0 }
0x1fe8   :  { %2753 = vmatprep.mubr.msk.f32.mxu1 %vm134_vm0, %v2388_v54 }
0x1fe9   :  { %2754 = vmatmul.mubr.msk.f32.gmra.mrb[26].mxu1 %vm134_vm0, %v2389_v55 }
0x20b0   :  { %v2746_v60 = vpop.f32.mrb[20].mxu1 }
0x20b1   :  { %v2497_v22 = vadd.f32 %v2746_v60, %v2663_v51  ;;  %v2491_v52 = vpop.f32.mrb[21].mxu1 }
0x20b2   :  { %v2492_v36 = vadd.f32 %v2663_v51, %v2491_v52 }
0x20b3   :  { %v2673_v47 = vmul.f32 -1.442695, %v2497_v22 }
0x20b4   :  { %v2672_v62 = vmul.f32 -1.442695, %v2492_v36  ;;  %v2749_v26 = vpop.f32.mrb[22].mxu1 }
0x20b5   :  { %3259 = vpow2.f32 %v2673_v47  ;;  %v2507_v30 = vadd.f32 %v2749_v26, %v2663_v51  ;;  %v2501_v53 = vpop.f32.mrb[23].mxu1 }
0x20b6   :  { %3261 = vpow2.f32 %v2672_v62  ;;  %v2502_v56 = vadd.f32 %v2663_v51, %v2501_v53 }
0x20b7   :  { %v2675_v0 = vmul.f32 -1.442695, %v2507_v30 }
0x20b8   :  { %v2674_v18 = vmul.f32 -1.442695, %v2502_v56  ;;  %v2752_v58 = vpop.f32.mrb[24].mxu1 }
0x20b9   :  { %3263 = vpow2.f32 %v2675_v0  ;;  %v2517_v38 = vadd.f32 %v2752_v58, %v2663_v51  ;;  %v2511_v5 = vpop.f32.mrb[25].mxu1 }
0x20ba   :  { %3265 = vpow2.f32 %v2674_v18  ;;  %v2512_v41 = vadd.f32 %v2663_v51, %v2511_v5 }
0x20bb   :  { %v2677_v8 = vmul.f32 -1.442695, %v2517_v38 }
0x20bc   :  { %v2676_v25 = vmul.f32 -1.442695, %v2512_v41  ;;  %v2755_v29 = vpop.f32.mrb[26].mxu1 }
0x20bd   :  { %3267 = vpow2.f32 %v2677_v8  ;;  %v2527_v3 = vadd.f32 %v2755_v29, %v2663_v51  ;;  %v2521_v33 = vpop.f32.mrb[27].mxu1 }
0x20be   :  { %3269 = vpow2.f32 %v2676_v25  ;;  %v2522_v46 = vadd.f32 %v2663_v51, %v2521_v33 }
0x20bf   :  { %v3260_v10 = vpop.eup %3259  ;;  %v2679_v32 = vmul.f32 -1.442695, %v2527_v3 }
0x20c0   :  { %v3262_v15 = vpop.eup %3261  ;;  %v2555_v13 = vadd.f32 1.0, %v3260_v10  ;;  %v2678_v42 = vmul.f32 -1.442695, %v2522_v46 }
0x20c1   :  { %v2554_v19 = vadd.f32 1.0, %v3262_v15  ;;  %3271 = vpow2.f32 %v2679_v32 }
0x20c2   :  { %3273 = vrcp.f32 %v2555_v13 }
0x20c3   :  { %v3264_v20 = vpop.eup %3263  ;;  %3275 = vrcp.f32 %v2554_v19 }
0x20c4   :  { %v3266_v1 = vpop.eup %3265  ;;  %v2557_v6 = vadd.f32 1.0, %v3264_v20  ;;  %3277 = vpow2.f32 %v2678_v42 }
0x20c5   :  { %v2556_v40 = vadd.f32 1.0, %v3266_v1 }
0x20c6   :  { %3279 = vrcp.f32 %v2557_v6 }
0x20c7   :  { %v3268_v43 = vpop.eup %3267  ;;  %3281 = vrcp.f32 %v2556_v40 }
0x20c8   :  { %v3270_v17 = vpop.eup %3269  ;;  %v2559_v4 = vadd.f32 1.0, %v3268_v43 }
0x20c9   :  { %v2558_v45 = vadd.f32 1.0, %v3270_v17 }
0x20ca   :  { %3283 = vrcp.f32 %v2559_v4 }
0x20cb   :  { %v3272_v59 = vpop.eup %3271  ;;  %3285 = vrcp.f32 %v2558_v45 }
0x20cc   :  { %v3274_v21 = vpop.eup %3273  ;;  %v2561_v39 = vadd.f32 1.0, %v3272_v59 }
0x20cd   :  { %v3276_v37 = vpop.eup %3275  ;;  %2579 = vst [vmem:[%s4307_s11 + $0x8] sm:$0xff] %v3274_v21 }
0x20ce   :  { %v3278_v12 = vpop.eup %3277  ;;  %2578 = vst [vmem:[%s4307_s11] sm:$0xff] %v3276_v37  ;;  %3287 = vrcp.f32 %v2561_v39 }
0x20cf   :  { %v2560_v57 = vadd.f32 1.0, %v3278_v12 }
0x20d0   :  { %v3280_v31 = vpop.eup %3279 }
0x20d1   :  { %v3282_v23 = vpop.eup %3281  ;;  %2581 = vst [vmem:[%s4307_s11 + $0x18] sm:$0xff] %v3280_v31  ;;  %3289 = vrcp.f32 %v2560_v57 }
0x20d2   :  { %2580 = vst [vmem:[%s4307_s11 + $0x10] sm:$0xff] %v3282_v23 }
0x20d4   :  { %v3284_v61 = vpop.eup %3283 }
0x20d5   :  { %v3286_v7 = vpop.eup %3285  ;;  %2583 = vst [vmem:[%s4307_s11 + $0x28] sm:$0xff] %v3284_v61 }
0x20d6   :  { %2582 = vst [vmem:[%s4307_s11 + $0x20] sm:$0xff] %v3286_v7 }
0x20d8   :  { %v3288_v48 = vpop.eup %3287 }
0x20d9   :  { %2585 = vst [vmem:[%s4307_s11 + $0x38] sm:$0xff] %v3288_v48 }
0x20db   :  { %v3290_v27 = vpop.eup %3289 }
0x20dc   :  { %2584 = vst [vmem:[%s4307_s11 + $0x30] sm:$0xff] %v3290_v27 }
0x20dd   :  { %2590 = vsyncpa [#allocation5], 1 }
0x20de   :  { %2591 = vsyncpa [#allocation7], 1 }

</bundles_post_ra>
